<compile_context>
chip_gen: v7x
topology: tpu7x:2x2x1
jax: 0.10.0
libtpu: 0.0.40
codegen_flags: <defaults>
</compile_context>

<pallas_src>
import functools
import math

import jax
import jax.numpy as jnp
from jax.experimental import pallas as pl
from jax.experimental.pallas import tpu as pltpu


_MATMUL_WEIGHT_KEYS = ("wq", "wk", "wv", "wo", "w1", "w2", "w_io", "w_go")
_DEFAULT_COMPUTE_DTYPE = jnp.bfloat16      # MXU-native on v5e / v6e / v7x


# ----------------------------------------------------------------------------
# Small helpers
# ----------------------------------------------------------------------------
def _identity_copy_kernel(x_ref, o_ref):
    o_ref[...] = x_ref[...]


@functools.lru_cache(maxsize=None)
def _weight_pipeline_mode():
    """pl.Buffered(1) for grid-constant weight blocks (halves their VMEM footprint)
    if this jax/Mosaic build supports single-buffered pipeline_mode, else None."""
    try:
        spec = pl.BlockSpec((8, 128), lambda i: (0, 0), pipeline_mode=pl.Buffered(1))
        fn = pl.pallas_call(
            _identity_copy_kernel,
            out_shape=jax.ShapeDtypeStruct((8, 128), jnp.float32),
            grid=(2,),
            in_specs=[spec],
            out_specs=pl.BlockSpec((8, 128), lambda i: (0, 0)),
        )
        jax.jit(fn).lower(jax.ShapeDtypeStruct((8, 128), jnp.float32)).compile()
        return pl.Buffered(1)
    except Exception:          # pragma: no cover - depends on jax/Mosaic version
        return None


def _const_spec(shape):
    """BlockSpec for a grid-constant (weight/bias) operand, single-buffered if possible."""
    pm = _weight_pipeline_mode()
    idx = lambda *_: (0,) * len(shape)
    if pm is None:
        return pl.BlockSpec(shape, idx)
    return pl.BlockSpec(shape, idx, pipeline_mode=pm)


def _row_tile(m, target=512):
    """Largest multiple-of-8 divisor of m that is <= target (keeps (tm, N) row blocks
    VMEM-bounded and near the ~85% HBM-roofline 512-row sweet spot)."""
    best = 0
    for t in range(8, min(m, target) + 1, 8):
        if m % t == 0:
            best = t
    if best:
        return best
    best = 1
    for t in range(1, min(m, target) + 1):
        if m % t == 0:
            best = t
    return best


def _batch_tile(batch, seq_max, target_rows=512):
    """Batch tile Bt: largest divisor of `batch` with Bt*seq_max <= target_rows, while
    keeping >=2 grid steps whenever batch > 1 so both v7x TensorCores get work."""
    best = 1
    for cand in range(1, batch + 1):
        if batch % cand:
            continue
        if cand * seq_max > target_rows:
            break
        if batch > 1 and batch // cand < 2:
            continue
        best = cand
    return best


def _vmem_limit(est_bytes):
    """Advisory scoped-VMEM limit: >= 32 MiB (also raises v5e's 16 MiB default),
    capped at 64 MiB (v7x physical)."""
    return int(max(32 << 20, min(2 * est_bytes, 64 << 20)))


def _mosaic_params(est_bytes, axes=("parallel",)):
    return pltpu.CompilerParams(dimension_semantics=axes,
                                vmem_limit_bytes=_vmem_limit(est_bytes))


# ----------------------------------------------------------------------------
# Fused encoder/decoder sub-layer kernel
#   out = [outer_res +] r + FFN(norm_f(r)),  r = x + MHA(norm_a(x), kv, kv)
#   self_attn=True  -> kv = norm_a(x)   (EncoderLayer)
#   self_attn=False -> kv = e_outputs   (BriefDecoderLayer)
# ----------------------------------------------------------------------------
def _fused_layer_kernel(*refs, heads, d_k, scale, eps, self_attn, has_res,
                        compute_dtype):
    refs = list(refs)
    o_ref = refs.pop()
    res_ref = refs.pop() if has_res else None
    it = iter(refs)
    x_ref = next(it)
    kv_ref = None if self_attn else next(it)
    na_a, na_b = next(it), next(it)            # attention-path Norm (alpha, bias)
    wq, bq = next(it), next(it)
    wk, bk = next(it), next(it)
    wv, bv = next(it), next(it)
    wo, bo = next(it), next(it)
    nf_a, nf_b = next(it), next(it)            # FFN-path Norm (alpha, bias)
    w1, b1 = next(it), next(it)
    w2, b2 = next(it), next(it)

    bt, sq, d = x_ref.shape
    m = bt * sq

    def norm(t, a_ref, b_ref):
        # PyTorch Norm: alpha * (t - mean) / (std + eps) + bias, std UNBIASED (ddof=1)
        mu = jnp.mean(t, axis=-1, keepdims=True)
        tc = t - mu
        var = jnp.sum(tc * tc, axis=-1, keepdims=True) * (1.0 / (d - 1))
        return a_ref[...] * tc * pl.reciprocal(jnp.sqrt(var) + eps) + b_ref[...]

    x = x_ref[...].astype(jnp.float32).reshape(m, d)
    x2 = norm(x, na_a, na_b)
    x2c = x2.astype(compute_dtype)

    if self_attn:
        sk, kvc = sq, x2c
    else:
        _, sk, _ = kv_ref.shape
        kvc = kv_ref[...].astype(compute_dtype).reshape(bt * sk, d)

    # Q/K/V projections: full (M, D) @ (D, D) bf16 GEMMs, f32 accumulation, f32 bias.
    q = jnp.dot(x2c, wq[...].astype(compute_dtype),
                preferred_element_type=jnp.float32) + bq[...]
    k = jnp.dot(kvc, wk[...].astype(compute_dtype),
                preferred_element_type=jnp.float32) + bk[...]
    v = jnp.dot(kvc, wv[...].astype(compute_dtype),
                preferred_element_type=jnp.float32) + bv[...]

    q3 = q.reshape(bt, sq, d).astype(compute_dtype)
    k3 = k.reshape(bt, sk, d).astype(compute_dtype)
    v3 = v.reshape(bt, sk, d).astype(compute_dtype)

    # Scaled dot-product attention, batched over the batch tile per head.
    # TODO(synk): flash-style Sk tiling (online softmax) for long sequences so the full
    # (Sq, Sk) scores / resident K,V never outgrow v7x's 64 MiB VMEM.
    head_outs = []
    for h in range(heads):
        lo = h * d_k
        qh = q3[:, :, lo:lo + d_k]
        kh = k3[:, :, lo:lo + d_k]
        vh = v3[:, :, lo:lo + d_k]
        s = jnp.einsum("bqd,bkd->bqk", qh, kh,
                       preferred_element_type=jnp.float32) * scale
        s = s - jnp.max(s, axis=-1, keepdims=True)
        p = jnp.exp(s)
        p = p * pl.reciprocal(jnp.sum(p, axis=-1, keepdims=True), approx=True)
        head_outs.append(jnp.einsum("bqk,bkd->bqd", p.astype(compute_dtype), vh,
                                    preferred_element_type=jnp.float32))

    # Single (M, D) @ (D, D) output projection on the concatenated heads
    # (no per-head K=d_k GEMMs, no bf16-misaligned wo row slices).
    concat = jnp.concatenate(head_outs, axis=-1).reshape(m, d)
    attn_out = jnp.dot(concat.astype(compute_dtype), wo[...].astype(compute_dtype),
                       preferred_element_type=jnp.float32) + bo[...]
    x = x + attn_out                                     # attention residual

    # FFN: norm -> W1 + ReLU -> W2 -> residual (dropout = identity at inference)
    x3 = norm(x, nf_a, nf_b).astype(compute_dtype)
    h1 = jnp.dot(x3, w1[...].astype(compute_dtype),
                 preferred_element_type=jnp.float32) + b1[...]
    h1 = jnp.maximum(h1, 0.0).astype(compute_dtype)
    y = jnp.dot(h1, w2[...].astype(compute_dtype),
                preferred_element_type=jnp.float32) + b2[...]
    out = x + y
    if has_res:   # fused ConnectionLayer top-level residual (image = image + image_t)
        out = out + res_ref[...].astype(jnp.float32).reshape(m, d)

    # TODO(synk): pad D to a 128-lane multiple (or fold into a (1, Bt*Sq*D) slab) when
    # d_model < 128 to avoid masked partial stores on v5e.
    o_ref[...] = out.reshape(bt, sq, d).astype(o_ref.dtype)


def fused_layer(x, kv, norm_attn, attn_p, norm_ff, ff_p, *, heads, self_attn,
                outer_residual=None, eps=1e-6, compute_dtype=_DEFAULT_COMPUTE_DTYPE):
    B, Sq, D = x.shape
    assert D % heads == 0, "d_model must be divisible by heads"
    d_k = D // heads
    Sk = Sq if self_attn else kv.shape[1]
    d_ff = ff_p["w1"].shape[1]
    Bt = _batch_tile(B, max(Sq, Sk))
    has_res = outer_residual is not None

    row = lambda a: a.reshape(1, -1)
    xspec = lambda S: pl.BlockSpec((Bt, S, D), lambda b: (b, 0, 0))

    args, specs = [x], [xspec(Sq)]
    if not self_attn:
        args.append(kv)
        specs.append(xspec(Sk))
    args += [row(norm_attn[0]), row(norm_attn[1]),
             attn_p["wq"], row(attn_p["bq"]), attn_p["wk"], row(attn_p["bk"]),
             attn_p["wv"], row(attn_p["bv"]), attn_p["wo"], row(attn_p["bo"]),
             row(norm_ff[0]), row(norm_ff[1]),
             ff_p["w1"], row(ff_p["b1"]), ff_p["w2"], row(ff_p["b2"])]
    specs += [_const_spec((1, D)), _const_spec((1, D)),
              _const_spec((D, D)), _const_spec((1, D)),
              _const_spec((D, D)), _const_spec((1, D)),
              _const_spec((D, D)), _const_spec((1, D)),
              _const_spec((D, D)), _const_spec((1, D)),
              _const_spec((1, D)), _const_spec((1, D)),
              _const_spec((D, d_ff)), _const_spec((1, d_ff)),
              _const_spec((d_ff, D)), _const_spec((1, D))]
    if has_res:
        args.append(outer_residual)
        specs.append(xspec(Sq))

    # VMEM budget: resident weights (single/double buffered) + pipelined activation
    # blocks + in-kernel f32 intermediates.
    wbytes = sum(int(w.size) * w.dtype.itemsize
                 for w in (attn_p["wq"], attn_p["wk"], attn_p["wv"], attn_p["wo"],
                           ff_p["w1"], ff_p["w2"]))
    wbytes *= 1 if _weight_pipeline_mode() is not None else 2
    blk = 4 * Bt * D * (Sq * (3 if has_res else 2) + (0 if self_attn else Sk))
    inter = 4 * Bt * (3 * max(Sq, Sk) * D + Sq * Sk + Sq * d_ff + 3 * Sq * D)
    est = wbytes + 2 * blk + inter

    kernel = functools.partial(
        _fused_layer_kernel, heads=heads, d_k=d_k, scale=1.0 / math.sqrt(d_k),
        eps=eps, self_attn=self_attn, has_res=has_res, compute_dtype=compute_dtype)

    return pl.pallas_call(
        kernel,
        out_shape=jax.ShapeDtypeStruct((B, Sq, D), x.dtype),
        grid=(B // Bt,),
        in_specs=specs,
        out_specs=pl.BlockSpec((Bt, Sq, D), lambda b: (b, 0, 0)),
        compiler_params=_mosaic_params(est),
    )(*args)
    # TODO(synk): attention-mask support (masks are always None on this forward path).
    # TODO(synk): add an Sq-parallel grid axis for v7x when B // Bt < 2.


# ----------------------------------------------------------------------------
# Row-tiled final linear projections (image_out / graph_out)
# ----------------------------------------------------------------------------
def _linear_kernel(x_ref, w_ref, b_ref, o_ref, *, compute_dtype):
    y = jnp.dot(x_ref[...].astype(compute_dtype), w_ref[...].astype(compute_dtype),
                preferred_element_type=jnp.float32) + b_ref[...]
    o_ref[...] = y.astype(o_ref.dtype)


def linear(x, w, b, *, compute_dtype=_DEFAULT_COMPUTE_DTYPE):
    M, K = x.shape
    N = w.shape[1]
    tm = _row_tile(M)
    wbytes = int(w.size) * w.dtype.itemsize
    wbytes *= 1 if _weight_pipeline_mode() is not None else 2
    est = wbytes + 2 * 4 * tm * (K + N)
    return pl.pallas_call(
        functools.partial(_linear_kernel, compute_dtype=compute_dtype),
        out_shape=jax.ShapeDtypeStruct((M, N), x.dtype),
        grid=(M // tm,),
        in_specs=[pl.BlockSpec((tm, K), lambda i: (i, 0)),
                  _const_spec((K, N)),
                  _const_spec((1, N))],
        out_specs=pl.BlockSpec((tm, N), lambda i: (i, 0)),
        compiler_params=_mosaic_params(est),
    )(x, w, b.reshape(1, N))


# ----------------------------------------------------------------------------
# Module forward: each encoder/decoder sub-layer is one fused pallas_call
# ----------------------------------------------------------------------------
def encoder_layer(x, p, heads):
    return fused_layer(x, None, (p["n1_a"], p["n1_b"]), p["attn"],
                       (p["n2_a"], p["n2_b"]), p["ff"],
                       heads=heads, self_attn=True)


def brief_decoder_layer(x, e_out, p, heads, outer_residual):
    return fused_layer(x, e_out, (p["n2_a"], p["n2_b"]), p["attn"],
                       (p["n3_a"], p["n3_b"]), p["ff"],
                       heads=heads, self_attn=False, outer_residual=outer_residual)


def connection_forward(image, graph, params, heads):
    # pe_mode == 0 -> positional encoding skipped; masks are None; dropout = identity.
    for lp in params["layers"]:
        e_image = encoder_layer(image, lp["image_encoder"], heads)
        e_graph = encoder_layer(graph, lp["graph_encoder"], heads)
        new_image = brief_decoder_layer(e_image, e_graph, lp["image_decoder"], heads, image)
        new_graph = brief_decoder_layer(e_graph, e_image, lp["graph_decoder"], heads, graph)
        image, graph = new_image, new_graph
    B, Si, D = image.shape
    Sg = graph.shape[1]
    image_out = linear(image.reshape(B * Si, D), params["w_io"], params["b_io"]).reshape(B, Si, D)
    graph_out = linear(graph.reshape(B * Sg, D), params["w_go"], params["b_go"]).reshape(B, Sg, D)
    return image_out, graph_out


# ----------------------------------------------------------------------------
# Deterministic parameter initialization (PyTorch-style uniform fan-in bounds)
# ----------------------------------------------------------------------------
def _init_linear(key, fan_in, fan_out):
    k1, k2 = jax.random.split(key)
    bound = 1.0 / math.sqrt(fan_in)
    w = jax.random.uniform(k1, (fan_in, fan_out), jnp.float32, -bound, bound)
    b = jax.random.uniform(k2, (fan_out,), jnp.float32, -bound, bound)
    return w, b


def _init_mha(key, d_model):
    ks = jax.random.split(key, 4)
    wq, bq = _init_linear(ks[0], d_model, d_model)
    wk, bk = _init_linear(ks[1], d_model, d_model)
    wv, bv = _init_linear(ks[2], d_model, d_model)
    wo, bo = _init_linear(ks[3], d_model, d_model)
    return dict(wq=wq, bq=bq, wk=wk, bk=bk, wv=wv, bv=bv, wo=wo, bo=bo)


def _init_ff(key, d_model, d_ff):
    k1, k2 = jax.random.split(key)
    w1, b1 = _init_linear(k1, d_model, d_ff)
    w2, b2 = _init_linear(k2, d_ff, d_model)
    return dict(w1=w1, b1=b1, w2=w2, b2=b2)


def _init_encoder(key, d_model, d_ff):
    k1, k2 = jax.random.split(key)
    return dict(
        n1_a=jnp.ones((d_model,), jnp.float32), n1_b=jnp.zeros((d_model,), jnp.float32),
        n2_a=jnp.ones((d_model,), jnp.float32), n2_b=jnp.zeros((d_model,), jnp.float32),
        attn=_init_mha(k1, d_model), ff=_init_ff(k2, d_model, d_ff),
    )


def _init_decoder(key, d_model, d_ff):
    k1, k2 = jax.random.split(key)
    return dict(
        n2_a=jnp.ones((d_model,), jnp.float32), n2_b=jnp.zeros((d_model,), jnp.float32),
        n3_a=jnp.ones((d_model,), jnp.float32), n3_b=jnp.zeros((d_model,), jnp.float32),
        attn=_init_mha(k1, d_model), ff=_init_ff(k2, d_model, d_ff),
    )


def init_connection_params(key, d_model, N, d_ff=512):
    layers = []
    for _ in range(N):
        key, k1, k2, k3, k4 = jax.random.split(key, 5)
        layers.append(dict(
            image_encoder=_init_encoder(k1, d_model, d_ff),
            graph_encoder=_init_encoder(k2, d_model, d_ff),
            image_decoder=_init_decoder(k3, d_model, d_ff),
            graph_decoder=_init_decoder(k4, d_model, d_ff),
        ))
    key, k_io, k_go = jax.random.split(key, 3)
    w_io, b_io = _init_linear(k_io, d_model, d_model)
    w_go, b_go = _init_linear(k_go, d_model, d_model)
    return dict(layers=layers, w_io=w_io, b_io=b_io, w_go=w_go, b_go=b_go)


def prepare_params(params, matmul_dtype=_DEFAULT_COMPUTE_DTYPE):
    """Cast MXU weight matrices to bf16 (halves HBM traffic / resident-weight VMEM);
    keep biases and norm params in f32 for the VPU/EUP epilogues. Call once, outside jit."""
    _weight_pipeline_mode()   # prime the Buffered(1) probe outside any trace
    def cast(node):
        if isinstance(node, dict):
            return {k: (v.astype(matmul_dtype) if k in _MATMUL_WEIGHT_KEYS else cast(v))
                    for k, v in node.items()}
        if isinstance(node, list):
            return [cast(v) for v in node]
        return node
    return cast(params)


# ----------------------------------------------------------------------------
if __name__ == "__main__":
    d_model, N, heads = 32, 2, 4
    B, S_img, S_graph = 2, 8, 8

    root = jax.random.PRNGKey(0)
    k_params, k_img, k_graph = jax.random.split(root, 3)

    params = prepare_params(init_connection_params(k_params, d_model, N))
    image = jax.random.normal(k_img, (B, S_img, d_model), jnp.float32)
    graph = jax.random.normal(k_graph, (B, S_graph, d_model), jnp.float32)

    fwd = jax.jit(functools.partial(connection_forward, heads=heads))
    image_out, graph_out = fwd(image, graph, params)
    jax.block_until_ready((image_out, graph_out))

    assert image_out.shape == (B, S_img, d_model)
    assert graph_out.shape == (B, S_graph, d_model)
    assert bool(jnp.all(jnp.isfinite(image_out))) and bool(jnp.all(jnp.isfinite(graph_out)))
    print("KERNEL_OK")
</pallas_src>

<mosaic_0001>
module attributes {stable_mosaic.version = 11 : i64} {
  func.func @_linear_kernel(%arg0: i32, %arg1: memref<16x32xf32, #tpu.memory_space<vmem>>, %arg2: memref<32x32xbf16, #tpu.memory_space<vmem>>, %arg3: memref<1x32xf32, #tpu.memory_space<vmem>>, %arg4: memref<16x32xf32, #tpu.memory_space<vmem>>) attributes {dimension_semantics = [#tpu.dimension_semantics<parallel>], iteration_bounds = array<i64: 1>, scalar_prefetch = 0 : i64, scratch_operands = 0 : i64, tpu.core_type = #tpu.core_type<tc>, window_params = [{transform_indices = @transform_0, window_bounds = array<i64: 16, 32>}, {pipeline_mode = #tpu.pipeline_mode<synchronous>, transform_indices = @transform_1, window_bounds = array<i64: 32, 32>}, {pipeline_mode = #tpu.pipeline_mode<synchronous>, transform_indices = @transform_2, window_bounds = array<i64: 1, 32>}, {transform_indices = @transform_3, window_bounds = array<i64: 16, 32>}]} {
    %c0 = arith.constant 0 : index
    %c0_0 = arith.constant 0 : index
    %0 = vector.load %arg1[%c0, %c0_0] : memref<16x32xf32, #tpu.memory_space<vmem>>, vector<16x32xf32>
    %1 = arith.truncf %0 : vector<16x32xf32> to vector<16x32xbf16>
    %c0_1 = arith.constant 0 : index
    %c0_2 = arith.constant 0 : index
    %2 = vector.load %arg2[%c0_1, %c0_2] : memref<32x32xbf16, #tpu.memory_space<vmem>>, vector<32x32xbf16>
    %cst = arith.constant dense<0.000000e+00> : vector<16x32xf32>
    %3 = tpu.matmul %1, %2, %cst {dimension_numbers = #tpu.dot_dimension_numbers<[1], [0], [0], [1], [0, 0, 1, 1], [], []>} : vector<16x32xbf16>, vector<32x32xbf16>, vector<16x32xf32> -> vector<16x32xf32>
    %c0_3 = arith.constant 0 : index
    %c0_4 = arith.constant 0 : index
    %4 = vector.load %arg3[%c0_3, %c0_4] : memref<1x32xf32, #tpu.memory_space<vmem>>, vector<1x32xf32>
    %5 = vector.broadcast %4 : vector<1x32xf32> to vector<16x32xf32>
    %6 = arith.addf %3, %5 : vector<16x32xf32>
    %c0_5 = arith.constant 0 : index
    %c0_6 = arith.constant 0 : index
    %7 = vector.load %arg4[%c0_5, %c0_6] : memref<16x32xf32, #tpu.memory_space<vmem>>, vector<16x32xf32>
    tpu.vector_store %arg4[%c0_5, %c0_6], %6 {strides = array<i32>} : memref<16x32xf32, #tpu.memory_space<vmem>>, vector<16x32xf32>,
    return
  }
  func.func @transform_0(%arg0: i32) -> (i32, i32) {
    %c0_i32 = arith.constant 0 : i32
    %c0_i32_0 = arith.constant 0 : i32
    return %arg0, %c0_i32 : i32, i32
  }
  func.func @transform_1(%arg0: i32) -> (i32, i32) {
    %c0_i32 = arith.constant 0 : i32
    %c0_i32_0 = arith.constant 0 : i32
    %c0_i32_1 = arith.constant 0 : i32
    return %c0_i32, %c0_i32_0 : i32, i32
  }
  func.func @transform_2(%arg0: i32) -> (i32, i32) {
    %c0_i32 = arith.constant 0 : i32
    %c0_i32_0 = arith.constant 0 : i32
    %c0_i32_1 = arith.constant 0 : i32
    return %c0_i32, %c0_i32_0 : i32, i32
  }
  func.func @transform_3(%arg0: i32) -> (i32, i32) {
    %c0_i32 = arith.constant 0 : i32
    %c0_i32_0 = arith.constant 0 : i32
    return %arg0, %c0_i32 : i32, i32
  }
}

module attributes {stable_mosaic.version = 11 : i64} {
  func.func @_fused_layer_kernel(%arg0: i32, %arg1: memref<1x8x32xf32, #tpu.memory_space<vmem>>, %arg2: memref<1x8x32xf32, #tpu.memory_space<vmem>>, %arg3: memref<1x32xf32, #tpu.memory_space<vmem>>, %arg4: memref<1x32xf32, #tpu.memory_space<vmem>>, %arg5: memref<32x32xbf16, #tpu.memory_space<vmem>>, %arg6: memref<1x32xf32, #tpu.memory_space<vmem>>, %arg7: memref<32x32xbf16, #tpu.memory_space<vmem>>, %arg8: memref<1x32xf32, #tpu.memory_space<vmem>>, %arg9: memref<32x32xbf16, #tpu.memory_space<vmem>>, %arg10: memref<1x32xf32, #tpu.memory_space<vmem>>, %arg11: memref<32x32xbf16, #tpu.memory_space<vmem>>, %arg12: memref<1x32xf32, #tpu.memory_space<vmem>>, %arg13: memref<1x32xf32, #tpu.memory_space<vmem>>, %arg14: memref<1x32xf32, #tpu.memory_space<vmem>>, %arg15: memref<32x512xbf16, #tpu.memory_space<vmem>>, %arg16: memref<1x512xf32, #tpu.memory_space<vmem>>, %arg17: memref<512x32xbf16, #tpu.memory_space<vmem>>, %arg18: memref<1x32xf32, #tpu.memory_space<vmem>>, %arg19: memref<1x8x32xf32, #tpu.memory_space<vmem>>, %arg20: memref<1x8x32xf32, #tpu.memory_space<vmem>>) attributes {dimension_semantics = [#tpu.dimension_semantics<parallel>], iteration_bounds = array<i64: 2>, scalar_prefetch = 0 : i64, scratch_operands = 0 : i64, tpu.core_type = #tpu.core_type<tc>, window_params = [{transform_indices = @transform_0, window_bounds = array<i64: 1, 8, 32>}, {transform_indices = @transform_1, window_bounds = array<i64: 1, 8, 32>}, {pipeline_mode = #tpu.pipeline_mode<synchronous>, transform_indices = @transform_2, window_bounds = array<i64: 1, 32>}, {pipeline_mode = #tpu.pipeline_mode<synchronous>, transform_indices = @transform_3, window_bounds = array<i64: 1, 32>}, {pipeline_mode = #tpu.pipeline_mode<synchronous>, transform_indices = @transform_4, window_bounds = array<i64: 32, 32>}, {pipeline_mode = #tpu.pipeline_mode<synchronous>, transform_indices = @transform_5, window_bounds = array<i64: 1, 32>}, {pipeline_mode = #tpu.pipeline_mode<synchronous>, transform_indices = @transform_6, window_bounds = array<i64: 32, 32>}, {pipeline_mode = #tpu.pipeline_mode<synchronous>, transform_indices = @transform_7, window_bounds = array<i64: 1, 32>}, {pipeline_mode = #tpu.pipeline_mode<synchronous>, transform_indices = @transform_8, window_bounds = array<i64: 32, 32>}, {pipeline_mode = #tpu.pipeline_mode<synchronous>, transform_indices = @transform_9, window_bounds = array<i64: 1, 32>}, {pipeline_mode = #tpu.pipeline_mode<synchronous>, transform_indices = @transform_10, window_bounds = array<i64: 32, 32>}, {pipeline_mode = #tpu.pipeline_mode<synchronous>, transform_indices = @transform_11, window_bounds = array<i64: 1, 32>}, {pipeline_mode = #tpu.pipeline_mode<synchronous>, transform_indices = @transform_12, window_bounds = array<i64: 1, 32>}, {pipeline_mode = #tpu.pipeline_mode<synchronous>, transform_indices = @transform_13, window_bounds = array<i64: 1, 32>}, {pipeline_mode = #tpu.pipeline_mode<synchronous>, transform_indices = @transform_14, window_bounds = array<i64: 32, 512>}, {pipeline_mode = #tpu.pipeline_mode<synchronous>, transform_indices = @transform_15, window_bounds = array<i64: 1, 512>}, {pipeline_mode = #tpu.pipeline_mode<synchronous>, transform_indices = @transform_16, window_bounds = array<i64: 512, 32>}, {pipeline_mode = #tpu.pipeline_mode<synchronous>, transform_indices = @transform_17, window_bounds = array<i64: 1, 32>}, {transform_indices = @transform_18, window_bounds = array<i64: 1, 8, 32>}, {transform_indices = @transform_19, window_bounds = array<i64: 1, 8, 32>}]} {
    %c0 = arith.constant 0 : index
    %c0_0 = arith.constant 0 : index
    %c0_1 = arith.constant 0 : index
    %0 = vector.load %arg1[%c0, %c0_0, %c0_1] : memref<1x8x32xf32, #tpu.memory_space<vmem>>, vector<1x8x32xf32>
    %1 = vector.shape_cast %0 : vector<1x8x32xf32> to vector<8x32xf32>
    %cst = arith.constant dense<0.000000e+00> : vector<8xf32>
    %2 = vector.multi_reduction <add>, %1, %cst [1] : vector<8x32xf32> to vector<8xf32>
    %3 = vector.shape_cast %2 : vector<8xf32> to vector<8x1xf32>
    %cst_2 = arith.constant 3.200000e+01 : f32
    %4 = vector.broadcast %cst_2 : f32 to vector<8x1xf32>
    %5 = arith.divf %3, %4 : vector<8x1xf32>
    %6 = vector.broadcast %5 : vector<8x1xf32> to vector<8x32xf32>
    %7 = arith.subf %1, %6 : vector<8x32xf32>
    %8 = arith.mulf %7, %7 : vector<8x32xf32>
    %cst_3 = arith.constant dense<0.000000e+00> : vector<8xf32>
    %9 = vector.multi_reduction <add>, %8, %cst_3 [1] : vector<8x32xf32> to vector<8xf32>
    %10 = vector.shape_cast %9 : vector<8xf32> to vector<8x1xf32>
    %cst_4 = arith.constant 0.0322580636 : f32
    %11 = vector.broadcast %cst_4 : f32 to vector<8x1xf32>
    %12 = arith.mulf %10, %11 : vector<8x1xf32>
    %c0_5 = arith.constant 0 : index
    %c0_6 = arith.constant 0 : index
    %13 = vector.load %arg3[%c0_5, %c0_6] : memref<1x32xf32, #tpu.memory_space<vmem>>, vector<1x32xf32>
    %14 = vector.broadcast %13 : vector<1x32xf32> to vector<8x32xf32>
    %15 = arith.mulf %14, %7 : vector<8x32xf32>
    %16 = math.sqrt %12 : vector<8x1xf32>
    %cst_7 = arith.constant 9.99999997E-7 : f32
    %17 = vector.broadcast %cst_7 : f32 to vector<8x1xf32>
    %18 = arith.addf %16, %17 : vector<8x1xf32>
    %19 = tpu.reciprocal %18 : vector<8x1xf32> -> vector<8x1xf32>
    %20 = vector.broadcast %19 : vector<8x1xf32> to vector<8x32xf32>
    %21 = arith.mulf %15, %20 : vector<8x32xf32>
    %c0_8 = arith.constant 0 : index
    %c0_9 = arith.constant 0 : index
    %22 = vector.load %arg4[%c0_8, %c0_9] : memref<1x32xf32, #tpu.memory_space<vmem>>, vector<1x32xf32>
    %23 = vector.broadcast %22 : vector<1x32xf32> to vector<8x32xf32>
    %24 = arith.addf %21, %23 : vector<8x32xf32>
    %25 = arith.truncf %24 : vector<8x32xf32> to vector<8x32xbf16>
    %c0_10 = arith.constant 0 : index
    %c0_11 = arith.constant 0 : index
    %c0_12 = arith.constant 0 : index
    %26 = vector.load %arg2[%c0_10, %c0_11, %c0_12] : memref<1x8x32xf32, #tpu.memory_space<vmem>>, vector<1x8x32xf32>
    %27 = arith.truncf %26 : vector<1x8x32xf32> to vector<1x8x32xbf16>
    %28 = vector.shape_cast %27 : vector<1x8x32xbf16> to vector<8x32xbf16>
    %c0_13 = arith.constant 0 : index
    %c0_14 = arith.constant 0 : index
    %29 = vector.load %arg5[%c0_13, %c0_14] : memref<32x32xbf16, #tpu.memory_space<vmem>>, vector<32x32xbf16>
    %cst_15 = arith.constant dense<0.000000e+00> : vector<8x32xf32>
    %30 = tpu.matmul %25, %29, %cst_15 {dimension_numbers = #tpu.dot_dimension_numbers<[1], [0], [0], [1], [0, 0, 1, 1], [], []>} : vector<8x32xbf16>, vector<32x32xbf16>, vector<8x32xf32> -> vector<8x32xf32>
    %c0_16 = arith.constant 0 : index
    %c0_17 = arith.constant 0 : index
    %31 = vector.load %arg6[%c0_16, %c0_17] : memref<1x32xf32, #tpu.memory_space<vmem>>, vector<1x32xf32>
    %32 = vector.broadcast %31 : vector<1x32xf32> to vector<8x32xf32>
    %33 = arith.addf %30, %32 : vector<8x32xf32>
    %c0_18 = arith.constant 0 : index
    %c0_19 = arith.constant 0 : index
    %34 = vector.load %arg7[%c0_18, %c0_19] : memref<32x32xbf16, #tpu.memory_space<vmem>>, vector<32x32xbf16>
    %cst_20 = arith.constant dense<0.000000e+00> : vector<8x32xf32>
    %35 = tpu.matmul %28, %34, %cst_20 {dimension_numbers = #tpu.dot_dimension_numbers<[1], [0], [0], [1], [0, 0, 1, 1], [], []>} : vector<8x32xbf16>, vector<32x32xbf16>, vector<8x32xf32> -> vector<8x32xf32>
    %c0_21 = arith.constant 0 : index
    %c0_22 = arith.constant 0 : index
    %36 = vector.load %arg8[%c0_21, %c0_22] : memref<1x32xf32, #tpu.memory_space<vmem>>, vector<1x32xf32>
    %37 = vector.broadcast %36 : vector<1x32xf32> to vector<8x32xf32>
    %38 = arith.addf %35, %37 : vector<8x32xf32>
    %c0_23 = arith.constant 0 : index
    %c0_24 = arith.constant 0 : index
    %39 = vector.load %arg9[%c0_23, %c0_24] : memref<32x32xbf16, #tpu.memory_space<vmem>>, vector<32x32xbf16>
    %cst_25 = arith.constant dense<0.000000e+00> : vector<8x32xf32>
    %40 = tpu.matmul %28, %39, %cst_25 {dimension_numbers = #tpu.dot_dimension_numbers<[1], [0], [0], [1], [0, 0, 1, 1], [], []>} : vector<8x32xbf16>, vector<32x32xbf16>, vector<8x32xf32> -> vector<8x32xf32>
    %c0_26 = arith.constant 0 : index
    %c0_27 = arith.constant 0 : index
    %41 = vector.load %arg10[%c0_26, %c0_27] : memref<1x32xf32, #tpu.memory_space<vmem>>, vector<1x32xf32>
    %42 = vector.broadcast %41 : vector<1x32xf32> to vector<8x32xf32>
    %43 = arith.addf %40, %42 : vector<8x32xf32>
    %44 = vector.shape_cast %33 : vector<8x32xf32> to vector<1x8x32xf32>
    %45 = arith.truncf %44 : vector<1x8x32xf32> to vector<1x8x32xbf16>
    %46 = vector.shape_cast %38 : vector<8x32xf32> to vector<1x8x32xf32>
    %47 = arith.truncf %46 : vector<1x8x32xf32> to vector<1x8x32xbf16>
    %48 = vector.shape_cast %43 : vector<8x32xf32> to vector<1x8x32xf32>
    %49 = arith.truncf %48 : vector<1x8x32xf32> to vector<1x8x32xbf16>
    %50 = vector.extract_strided_slice %45 {offsets = [0, 0, 0], sizes = [1, 8, 8], strides = [1, 1, 1]} : vector<1x8x32xbf16> to vector<1x8x8xbf16>
    %51 = vector.extract_strided_slice %47 {offsets = [0, 0, 0], sizes = [1, 8, 8], strides = [1, 1, 1]} : vector<1x8x32xbf16> to vector<1x8x8xbf16>
    %52 = vector.extract_strided_slice %49 {offsets = [0, 0, 0], sizes = [1, 8, 8], strides = [1, 1, 1]} : vector<1x8x32xbf16> to vector<1x8x8xbf16>
    "tpu.trace_start"() <{level = 10 : i32, message = "bqd,bkd->bqk"}> : () -> ()
    %cst_28 = arith.constant dense<0.000000e+00> : vector<1x8x8xf32>
    %53 = tpu.matmul %50, %51, %cst_28 {dimension_numbers = #tpu.dot_dimension_numbers<[2], [2], [1], [1], [0, 0, 0, 1, 1, 1], [0], [0]>} : vector<1x8x8xbf16>, vector<1x8x8xbf16>, vector<1x8x8xf32> -> vector<1x8x8xf32>
    "tpu.trace_stop"() : () -> ()
    %cst_29 = arith.constant 0.353553385 : f32
    %54 = vector.broadcast %cst_29 : f32 to vector<1x8x8xf32>
    %55 = arith.mulf %53, %54 : vector<1x8x8xf32>
    %cst_30 = arith.constant dense<0xFF800000> : vector<1x8xf32>
    %56 = vector.multi_reduction <maximumf>, %55, %cst_30 [2] : vector<1x8x8xf32> to vector<1x8xf32>
    %57 = vector.shape_cast %56 : vector<1x8xf32> to vector<1x8x1xf32>
    %58 = vector.broadcast %57 : vector<1x8x1xf32> to vector<1x8x8xf32>
    %59 = arith.subf %55, %58 : vector<1x8x8xf32>
    %60 = math.exp %59 : vector<1x8x8xf32>
    %cst_31 = arith.constant dense<0.000000e+00> : vector<1x8xf32>
    %61 = vector.multi_reduction <add>, %60, %cst_31 [2] : vector<1x8x8xf32> to vector<1x8xf32>
    %62 = vector.shape_cast %61 : vector<1x8xf32> to vector<1x8x1xf32>
    %63 = tpu.reciprocal %62 {approx = true} : vector<1x8x1xf32> -> vector<1x8x1xf32>
    %64 = vector.broadcast %63 : vector<1x8x1xf32> to vector<1x8x8xf32>
    %65 = arith.mulf %60, %64 : vector<1x8x8xf32>
    %66 = arith.truncf %65 : vector<1x8x8xf32> to vector<1x8x8xbf16>
    "tpu.trace_start"() <{level = 10 : i32, message = "bqk,bkd->bqd"}> : () -> ()
    %cst_32 = arith.constant dense<0.000000e+00> : vector<1x8x8xf32>
    %67 = tpu.matmul %66, %52, %cst_32 {dimension_numbers = #tpu.dot_dimension_numbers<[2], [1], [1], [2], [0, 0, 0, 1, 1, 2], [0], [0]>} : vector<1x8x8xbf16>, vector<1x8x8xbf16>, vector<1x8x8xf32> -> vector<1x8x8xf32>
    "tpu.trace_stop"() : () -> ()
    %68 = vector.extract_strided_slice %45 {offsets = [0, 0, 8], sizes = [1, 8, 8], strides = [1, 1, 1]} : vector<1x8x32xbf16> to vector<1x8x8xbf16>
    %69 = vector.extract_strided_slice %47 {offsets = [0, 0, 8], sizes = [1, 8, 8], strides = [1, 1, 1]} : vector<1x8x32xbf16> to vector<1x8x8xbf16>
    %70 = vector.extract_strided_slice %49 {offsets = [0, 0, 8], sizes = [1, 8, 8], strides = [1, 1, 1]} : vector<1x8x32xbf16> to vector<1x8x8xbf16>
    "tpu.trace_start"() <{level = 10 : i32, message = "bqd,bkd->bqk"}> : () -> ()
    %cst_33 = arith.constant dense<0.000000e+00> : vector<1x8x8xf32>
    %71 = tpu.matmul %68, %69, %cst_33 {dimension_numbers = #tpu.dot_dimension_numbers<[2], [2], [1], [1], [0, 0, 0, 1, 1, 1], [0], [0]>} : vector<1x8x8xbf16>, vector<1x8x8xbf16>, vector<1x8x8xf32> -> vector<1x8x8xf32>
    "tpu.trace_stop"() : () -> ()
    %cst_34 = arith.constant 0.353553385 : f32
    %72 = vector.broadcast %cst_34 : f32 to vector<1x8x8xf32>
    %73 = arith.mulf %71, %72 : vector<1x8x8xf32>
    %cst_35 = arith.constant dense<0xFF800000> : vector<1x8xf32>
    %74 = vector.multi_reduction <maximumf>, %73, %cst_35 [2] : vector<1x8x8xf32> to vector<1x8xf32>
    %75 = vector.shape_cast %74 : vector<1x8xf32> to vector<1x8x1xf32>
    %76 = vector.broadcast %75 : vector<1x8x1xf32> to vector<1x8x8xf32>
    %77 = arith.subf %73, %76 : vector<1x8x8xf32>
    %78 = math.exp %77 : vector<1x8x8xf32>
    %cst_36 = arith.constant dense<0.000000e+00> : vector<1x8xf32>
    %79 = vector.multi_reduction <add>, %78, %cst_36 [2] : vector<1x8x8xf32> to vector<1x8xf32>
    %80 = vector.shape_cast %79 : vector<1x8xf32> to vector<1x8x1xf32>
    %81 = tpu.reciprocal %80 {approx = true} : vector<1x8x1xf32> -> vector<1x8x1xf32>
    %82 = vector.broadcast %81 : vector<1x8x1xf32> to vector<1x8x8xf32>
    %83 = arith.mulf %78, %82 : vector<1x8x8xf32>
    %84 = arith.truncf %83 : vector<1x8x8xf32> to vector<1x8x8xbf16>
    "tpu.trace_start"() <{level = 10 : i32, message = "bqk,bkd->bqd"}> : () -> ()
    %cst_37 = arith.constant dense<0.000000e+00> : vector<1x8x8xf32>
    %85 = tpu.matmul %84, %70, %cst_37 {dimension_numbers = #tpu.dot_dimension_numbers<[2], [1], [1], [2], [0, 0, 0, 1, 1, 2], [0], [0]>} : vector<1x8x8xbf16>, vector<1x8x8xbf16>, vector<1x8x8xf32> -> vector<1x8x8xf32>
    "tpu.trace_stop"() : () -> ()
    %86 = vector.extract_strided_slice %45 {offsets = [0, 0, 16], sizes = [1, 8, 8], strides = [1, 1, 1]} : vector<1x8x32xbf16> to vector<1x8x8xbf16>
    %87 = vector.extract_strided_slice %47 {offsets = [0, 0, 16], sizes = [1, 8, 8], strides = [1, 1, 1]} : vector<1x8x32xbf16> to vector<1x8x8xbf16>
    %88 = vector.extract_strided_slice %49 {offsets = [0, 0, 16], sizes = [1, 8, 8], strides = [1, 1, 1]} : vector<1x8x32xbf16> to vector<1x8x8xbf16>
    "tpu.trace_start"() <{level = 10 : i32, message = "bqd,bkd->bqk"}> : () -> ()
    %cst_38 = arith.constant dense<0.000000e+00> : vector<1x8x8xf32>
    %89 = tpu.matmul %86, %87, %cst_38 {dimension_numbers = #tpu.dot_dimension_numbers<[2], [2], [1], [1], [0, 0, 0, 1, 1, 1], [0], [0]>} : vector<1x8x8xbf16>, vector<1x8x8xbf16>, vector<1x8x8xf32> -> vector<1x8x8xf32>
    "tpu.trace_stop"() : () -> ()
    %cst_39 = arith.constant 0.353553385 : f32
    %90 = vector.broadcast %cst_39 : f32 to vector<1x8x8xf32>
    %91 = arith.mulf %89, %90 : vector<1x8x8xf32>
    %cst_40 = arith.constant dense<0xFF800000> : vector<1x8xf32>
    %92 = vector.multi_reduction <maximumf>, %91, %cst_40 [2] : vector<1x8x8xf32> to vector<1x8xf32>
    %93 = vector.shape_cast %92 : vector<1x8xf32> to vector<1x8x1xf32>
    %94 = vector.broadcast %93 : vector<1x8x1xf32> to vector<1x8x8xf32>
    %95 = arith.subf %91, %94 : vector<1x8x8xf32>
    %96 = math.exp %95 : vector<1x8x8xf32>
    %cst_41 = arith.constant dense<0.000000e+00> : vector<1x8xf32>
    %97 = vector.multi_reduction <add>, %96, %cst_41 [2] : vector<1x8x8xf32> to vector<1x8xf32>
    %98 = vector.shape_cast %97 : vector<1x8xf32> to vector<1x8x1xf32>
    %99 = tpu.reciprocal %98 {approx = true} : vector<1x8x1xf32> -> vector<1x8x1xf32>
    %100 = vector.broadcast %99 : vector<1x8x1xf32> to vector<1x8x8xf32>
    %101 = arith.mulf %96, %100 : vector<1x8x8xf32>
    %102 = arith.truncf %101 : vector<1x8x8xf32> to vector<1x8x8xbf16>
    "tpu.trace_start"() <{level = 10 : i32, message = "bqk,bkd->bqd"}> : () -> ()
    %cst_42 = arith.constant dense<0.000000e+00> : vector<1x8x8xf32>
    %103 = tpu.matmul %102, %88, %cst_42 {dimension_numbers = #tpu.dot_dimension_numbers<[2], [1], [1], [2], [0, 0, 0, 1, 1, 2], [0], [0]>} : vector<1x8x8xbf16>, vector<1x8x8xbf16>, vector<1x8x8xf32> -> vector<1x8x8xf32>
    "tpu.trace_stop"() : () -> ()
    %104 = vector.extract_strided_slice %45 {offsets = [0, 0, 24], sizes = [1, 8, 8], strides = [1, 1, 1]} : vector<1x8x32xbf16> to vector<1x8x8xbf16>
    %105 = vector.extract_strided_slice %47 {offsets = [0, 0, 24], sizes = [1, 8, 8], strides = [1, 1, 1]} : vector<1x8x32xbf16> to vector<1x8x8xbf16>
    %106 = vector.extract_strided_slice %49 {offsets = [0, 0, 24], sizes = [1, 8, 8], strides = [1, 1, 1]} : vector<1x8x32xbf16> to vector<1x8x8xbf16>
    "tpu.trace_start"() <{level = 10 : i32, message = "bqd,bkd->bqk"}> : () -> ()
    %cst_43 = arith.constant dense<0.000000e+00> : vector<1x8x8xf32>
    %107 = tpu.matmul %104, %105, %cst_43 {dimension_numbers = #tpu.dot_dimension_numbers<[2], [2], [1], [1], [0, 0, 0, 1, 1, 1], [0], [0]>} : vector<1x8x8xbf16>, vector<1x8x8xbf16>, vector<1x8x8xf32> -> vector<1x8x8xf32>
    "tpu.trace_stop"() : () -> ()
    %cst_44 = arith.constant 0.353553385 : f32
    %108 = vector.broadcast %cst_44 : f32 to vector<1x8x8xf32>
    %109 = arith.mulf %107, %108 : vector<1x8x8xf32>
    %cst_45 = arith.constant dense<0xFF800000> : vector<1x8xf32>
    %110 = vector.multi_reduction <maximumf>, %109, %cst_45 [2] : vector<1x8x8xf32> to vector<1x8xf32>
    %111 = vector.shape_cast %110 : vector<1x8xf32> to vector<1x8x1xf32>
    %112 = vector.broadcast %111 : vector<1x8x1xf32> to vector<1x8x8xf32>
    %113 = arith.subf %109, %112 : vector<1x8x8xf32>
    %114 = math.exp %113 : vector<1x8x8xf32>
    %cst_46 = arith.constant dense<0.000000e+00> : vector<1x8xf32>
    %115 = vector.multi_reduction <add>, %114, %cst_46 [2] : vector<1x8x8xf32> to vector<1x8xf32>
    %116 = vector.shape_cast %115 : vector<1x8xf32> to vector<1x8x1xf32>
    %117 = tpu.reciprocal %116 {approx = true} : vector<1x8x1xf32> -> vector<1x8x1xf32>
    %118 = vector.broadcast %117 : vector<1x8x1xf32> to vector<1x8x8xf32>
    %119 = arith.mulf %114, %118 : vector<1x8x8xf32>
    %120 = arith.truncf %119 : vector<1x8x8xf32> to vector<1x8x8xbf16>
    "tpu.trace_start"() <{level = 10 : i32, message = "bqk,bkd->bqd"}> : () -> ()
    %cst_47 = arith.constant dense<0.000000e+00> : vector<1x8x8xf32>
    %121 = tpu.matmul %120, %106, %cst_47 {dimension_numbers = #tpu.dot_dimension_numbers<[2], [1], [1], [2], [0, 0, 0, 1, 1, 2], [0], [0]>} : vector<1x8x8xbf16>, vector<1x8x8xbf16>, vector<1x8x8xf32> -> vector<1x8x8xf32>
    "tpu.trace_stop"() : () -> ()
    %122 = tpu.concatenate %67, %85, %103, %121 in 2 : vector<1x8x8xf32>, vector<1x8x8xf32>, vector<1x8x8xf32>, vector<1x8x8xf32> -> vector<1x8x32xf32>
    %123 = vector.shape_cast %122 : vector<1x8x32xf32> to vector<8x32xf32>
    %124 = arith.truncf %123 : vector<8x32xf32> to vector<8x32xbf16>
    %c0_48 = arith.constant 0 : index
    %c0_49 = arith.constant 0 : index
    %125 = vector.load %arg11[%c0_48, %c0_49] : memref<32x32xbf16, #tpu.memory_space<vmem>>, vector<32x32xbf16>
    %cst_50 = arith.constant dense<0.000000e+00> : vector<8x32xf32>
    %126 = tpu.matmul %124, %125, %cst_50 {dimension_numbers = #tpu.dot_dimension_numbers<[1], [0], [0], [1], [0, 0, 1, 1], [], []>} : vector<8x32xbf16>, vector<32x32xbf16>, vector<8x32xf32> -> vector<8x32xf32>
    %c0_51 = arith.constant 0 : index
    %c0_52 = arith.constant 0 : index
    %127 = vector.load %arg12[%c0_51, %c0_52] : memref<1x32xf32, #tpu.memory_space<vmem>>, vector<1x32xf32>
    %128 = vector.broadcast %127 : vector<1x32xf32> to vector<8x32xf32>
    %129 = arith.addf %126, %128 : vector<8x32xf32>
    %130 = arith.addf %1, %129 : vector<8x32xf32>
    %cst_53 = arith.constant dense<0.000000e+00> : vector<8xf32>
    %131 = vector.multi_reduction <add>, %130, %cst_53 [1] : vector<8x32xf32> to vector<8xf32>
    %132 = vector.shape_cast %131 : vector<8xf32> to vector<8x1xf32>
    %cst_54 = arith.constant 3.200000e+01 : f32
    %133 = vector.broadcast %cst_54 : f32 to vector<8x1xf32>
    %134 = arith.divf %132, %133 : vector<8x1xf32>
    %135 = vector.broadcast %134 : vector<8x1xf32> to vector<8x32xf32>
    %136 = arith.subf %130, %135 : vector<8x32xf32>
    %137 = arith.mulf %136, %136 : vector<8x32xf32>
    %cst_55 = arith.constant dense<0.000000e+00> : vector<8xf32>
    %138 = vector.multi_reduction <add>, %137, %cst_55 [1] : vector<8x32xf32> to vector<8xf32>
    %139 = vector.shape_cast %138 : vector<8xf32> to vector<8x1xf32>
    %cst_56 = arith.constant 0.0322580636 : f32
    %140 = vector.broadcast %cst_56 : f32 to vector<8x1xf32>
    %141 = arith.mulf %139, %140 : vector<8x1xf32>
    %c0_57 = arith.constant 0 : index
    %c0_58 = arith.constant 0 : index
    %142 = vector.load %arg13[%c0_57, %c0_58] : memref<1x32xf32, #tpu.memory_space<vmem>>, vector<1x32xf32>
    %143 = vector.broadcast %142 : vector<1x32xf32> to vector<8x32xf32>
    %144 = arith.mulf %143, %136 : vector<8x32xf32>
    %145 = math.sqrt %141 : vector<8x1xf32>
    %cst_59 = arith.constant 9.99999997E-7 : f32
    %146 = vector.broadcast %cst_59 : f32 to vector<8x1xf32>
    %147 = arith.addf %145, %146 : vector<8x1xf32>
    %148 = tpu.reciprocal %147 : vector<8x1xf32> -> vector<8x1xf32>
    %149 = vector.broadcast %148 : vector<8x1xf32> to vector<8x32xf32>
    %150 = arith.mulf %144, %149 : vector<8x32xf32>
    %c0_60 = arith.constant 0 : index
    %c0_61 = arith.constant 0 : index
    %151 = vector.load %arg14[%c0_60, %c0_61] : memref<1x32xf32, #tpu.memory_space<vmem>>, vector<1x32xf32>
    %152 = vector.broadcast %151 : vector<1x32xf32> to vector<8x32xf32>
    %153 = arith.addf %150, %152 : vector<8x32xf32>
    %154 = arith.truncf %153 : vector<8x32xf32> to vector<8x32xbf16>
    %c0_62 = arith.constant 0 : index
    %c0_63 = arith.constant 0 : index
    %155 = vector.load %arg15[%c0_62, %c0_63] : memref<32x512xbf16, #tpu.memory_space<vmem>>, vector<32x512xbf16>
    %cst_64 = arith.constant dense<0.000000e+00> : vector<8x512xf32>
    %156 = tpu.matmul %154, %155, %cst_64 {dimension_numbers = #tpu.dot_dimension_numbers<[1], [0], [0], [1], [0, 0, 1, 1], [], []>} : vector<8x32xbf16>, vector<32x512xbf16>, vector<8x512xf32> -> vector<8x512xf32>
    %c0_65 = arith.constant 0 : index
    %c0_66 = arith.constant 0 : index
    %157 = vector.load %arg16[%c0_65, %c0_66] : memref<1x512xf32, #tpu.memory_space<vmem>>, vector<1x512xf32>
    %158 = vector.broadcast %157 : vector<1x512xf32> to vector<8x512xf32>
    %159 = arith.addf %156, %158 : vector<8x512xf32>
    %cst_67 = arith.constant 0.000000e+00 : f32
    %160 = vector.broadcast %cst_67 : f32 to vector<8x512xf32>
    %161 = arith.maximumf %159, %160 : vector<8x512xf32>
    %162 = arith.truncf %161 : vector<8x512xf32> to vector<8x512xbf16>
    %c0_68 = arith.constant 0 : index
    %c0_69 = arith.constant 0 : index
    %163 = vector.load %arg17[%c0_68, %c0_69] : memref<512x32xbf16, #tpu.memory_space<vmem>>, vector<512x32xbf16>
    %cst_70 = arith.constant dense<0.000000e+00> : vector<8x32xf32>
    %164 = tpu.matmul %162, %163, %cst_70 {dimension_numbers = #tpu.dot_dimension_numbers<[1], [0], [0], [1], [0, 0, 1, 1], [], []>} : vector<8x512xbf16>, vector<512x32xbf16>, vector<8x32xf32> -> vector<8x32xf32>
    %c0_71 = arith.constant 0 : index
    %c0_72 = arith.constant 0 : index
    %165 = vector.load %arg18[%c0_71, %c0_72] : memref<1x32xf32, #tpu.memory_space<vmem>>, vector<1x32xf32>
    %166 = vector.broadcast %165 : vector<1x32xf32> to vector<8x32xf32>
    %167 = arith.addf %164, %166 : vector<8x32xf32>
    %168 = arith.addf %130, %167 : vector<8x32xf32>
    %c0_73 = arith.constant 0 : index
    %c0_74 = arith.constant 0 : index
    %c0_75 = arith.constant 0 : index
    %169 = vector.load %arg19[%c0_73, %c0_74, %c0_75] : memref<1x8x32xf32, #tpu.memory_space<vmem>>, vector<1x8x32xf32>
    %170 = vector.shape_cast %169 : vector<1x8x32xf32> to vector<8x32xf32>
    %171 = arith.addf %168, %170 : vector<8x32xf32>
    %172 = vector.shape_cast %171 : vector<8x32xf32> to vector<1x8x32xf32>
    %c0_76 = arith.constant 0 : index
    %c0_77 = arith.constant 0 : index
    %c0_78 = arith.constant 0 : index
    %173 = vector.load %arg20[%c0_76, %c0_77, %c0_78] : memref<1x8x32xf32, #tpu.memory_space<vmem>>, vector<1x8x32xf32>
    tpu.vector_store %arg20[%c0_76, %c0_77, %c0_78], %172 {strides = array<i32>} : memref<1x8x32xf32, #tpu.memory_space<vmem>>, vector<1x8x32xf32>,
    return
  }
  func.func @transform_0(%arg0: i32) -> (i32, i32, i32) {
    %c0_i32 = arith.constant 0 : i32
    %c0_i32_0 = arith.constant 0 : i32
    %c0_i32_1 = arith.constant 0 : i32
    return %arg0, %c0_i32, %c0_i32_0 : i32, i32, i32
  }
  func.func @transform_1(%arg0: i32) -> (i32, i32, i32) {
    %c0_i32 = arith.constant 0 : i32
    %c0_i32_0 = arith.constant 0 : i32
    %c0_i32_1 = arith.constant 0 : i32
    return %arg0, %c0_i32, %c0_i32_0 : i32, i32, i32
  }
  func.func @transform_2(%arg0: i32) -> (i32, i32) {
    %c0_i32 = arith.constant 0 : i32
    %c0_i32_0 = arith.constant 0 : i32
    %c0_i32_1 = arith.constant 0 : i32
    return %c0_i32, %c0_i32_0 : i32, i32
  }
  func.func @transform_3(%arg0: i32) -> (i32, i32) {
    %c0_i32 = arith.constant 0 : i32
    %c0_i32_0 = arith.constant 0 : i32
    %c0_i32_1 = arith.constant 0 : i32
    return %c0_i32, %c0_i32_0 : i32, i32
  }
  func.func @transform_4(%arg0: i32) -> (i32, i32) {
    %c0_i32 = arith.constant 0 : i32
    %c0_i32_0 = arith.constant 0 : i32
    %c0_i32_1 = arith.constant 0 : i32
    return %c0_i32, %c0_i32_0 : i32, i32
  }
  func.func @transform_5(%arg0: i32) -> (i32, i32) {
    %c0_i32 = arith.constant 0 : i32
    %c0_i32_0 = arith.constant 0 : i32
    %c0_i32_1 = arith.constant 0 : i32
    return %c0_i32, %c0_i32_0 : i32, i32
  }
  func.func @transform_6(%arg0: i32) -> (i32, i32) {
    %c0_i32 = arith.constant 0 : i32
    %c0_i32_0 = arith.constant 0 : i32
    %c0_i32_1 = arith.constant 0 : i32
    return %c0_i32, %c0_i32_0 : i32, i32
  }
  func.func @transform_7(%arg0: i32) -> (i32, i32) {
    %c0_i32 = arith.constant 0 : i32
    %c0_i32_0 = arith.constant 0 : i32
    %c0_i32_1 = arith.constant 0 : i32
    return %c0_i32, %c0_i32_0 : i32, i32
  }
  func.func @transform_8(%arg0: i32) -> (i32, i32) {
    %c0_i32 = arith.constant 0 : i32
    %c0_i32_0 = arith.constant 0 : i32
    %c0_i32_1 = arith.constant 0 : i32
    return %c0_i32, %c0_i32_0 : i32, i32
  }
  func.func @transform_9(%arg0: i32) -> (i32, i32) {
    %c0_i32 = arith.constant 0 : i32
    %c0_i32_0 = arith.constant 0 : i32
    %c0_i32_1 = arith.constant 0 : i32
    return %c0_i32, %c0_i32_0 : i32, i32
  }
  func.func @transform_10(%arg0: i32) -> (i32, i32) {
    %c0_i32 = arith.constant 0 : i32
    %c0_i32_0 = arith.constant 0 : i32
    %c0_i32_1 = arith.constant 0 : i32
    return %c0_i32, %c0_i32_0 : i32, i32
  }
  func.func @transform_11(%arg0: i32) -> (i32, i32) {
    %c0_i32 = arith.constant 0 : i32
    %c0_i32_0 = arith.constant 0 : i32
    %c0_i32_1 = arith.constant 0 : i32
    return %c0_i32, %c0_i32_0 : i32, i32
  }
  func.func @transform_12(%arg0: i32) -> (i32, i32) {
    %c0_i32 = arith.constant 0 : i32
    %c0_i32_0 = arith.constant 0 : i32
    %c0_i32_1 = arith.constant 0 : i32
    return %c0_i32, %c0_i32_0 : i32, i32
  }
  func.func @transform_13(%arg0: i32) -> (i32, i32) {
    %c0_i32 = arith.constant 0 : i32
    %c0_i32_0 = arith.constant 0 : i32
    %c0_i32_1 = arith.constant 0 : i32
    return %c0_i32, %c0_i32_0 : i32, i32
  }
  func.func @transform_14(%arg0: i32) -> (i32, i32) {
    %c0_i32 = arith.constant 0 : i32
    %c0_i32_0 = arith.constant 0 : i32
    %c0_i32_1 = arith.constant 0 : i32
    return %c0_i32, %c0_i32_0 : i32, i32
  }
  func.func @transform_15(%arg0: i32) -> (i32, i32) {
    %c0_i32 = arith.constant 0 : i32
    %c0_i32_0 = arith.constant 0 : i32
    %c0_i32_1 = arith.constant 0 : i32
    return %c0_i32, %c0_i32_0 : i32, i32
  }
  func.func @transform_16(%arg0: i32) -> (i32, i32) {
    %c0_i32 = arith.constant 0 : i32
    %c0_i32_0 = arith.constant 0 : i32
    %c0_i32_1 = arith.constant 0 : i32
    return %c0_i32, %c0_i32_0 : i32, i32
  }
  func.func @transform_17(%arg0: i32) -> (i32, i32) {
    %c0_i32 = arith.constant 0 : i32
    %c0_i32_0 = arith.constant 0 : i32
    %c0_i32_1 = arith.constant 0 : i32
    return %c0_i32, %c0_i32_0 : i32, i32
  }
  func.func @transform_18(%arg0: i32) -> (i32, i32, i32) {
    %c0_i32 = arith.constant 0 : i32
    %c0_i32_0 = arith.constant 0 : i32
    %c0_i32_1 = arith.constant 0 : i32
    return %arg0, %c0_i32, %c0_i32_0 : i32, i32, i32
  }
  func.func @transform_19(%arg0: i32) -> (i32, i32, i32) {
    %c0_i32 = arith.constant 0 : i32
    %c0_i32_0 = arith.constant 0 : i32
    %c0_i32_1 = arith.constant 0 : i32
    return %arg0, %c0_i32, %c0_i32_0 : i32, i32, i32
  }
}

module attributes {stable_mosaic.version = 11 : i64} {
  func.func @_fused_layer_kernel(%arg0: i32, %arg1: memref<1x8x32xf32, #tpu.memory_space<vmem>>, %arg2: memref<1x32xf32, #tpu.memory_space<vmem>>, %arg3: memref<1x32xf32, #tpu.memory_space<vmem>>, %arg4: memref<32x32xbf16, #tpu.memory_space<vmem>>, %arg5: memref<1x32xf32, #tpu.memory_space<vmem>>, %arg6: memref<32x32xbf16, #tpu.memory_space<vmem>>, %arg7: memref<1x32xf32, #tpu.memory_space<vmem>>, %arg8: memref<32x32xbf16, #tpu.memory_space<vmem>>, %arg9: memref<1x32xf32, #tpu.memory_space<vmem>>, %arg10: memref<32x32xbf16, #tpu.memory_space<vmem>>, %arg11: memref<1x32xf32, #tpu.memory_space<vmem>>, %arg12: memref<1x32xf32, #tpu.memory_space<vmem>>, %arg13: memref<1x32xf32, #tpu.memory_space<vmem>>, %arg14: memref<32x512xbf16, #tpu.memory_space<vmem>>, %arg15: memref<1x512xf32, #tpu.memory_space<vmem>>, %arg16: memref<512x32xbf16, #tpu.memory_space<vmem>>, %arg17: memref<1x32xf32, #tpu.memory_space<vmem>>, %arg18: memref<1x8x32xf32, #tpu.memory_space<vmem>>) attributes {dimension_semantics = [#tpu.dimension_semantics<parallel>], iteration_bounds = array<i64: 2>, scalar_prefetch = 0 : i64, scratch_operands = 0 : i64, tpu.core_type = #tpu.core_type<tc>, window_params = [{transform_indices = @transform_0, window_bounds = array<i64: 1, 8, 32>}, {pipeline_mode = #tpu.pipeline_mode<synchronous>, transform_indices = @transform_1, window_bounds = array<i64: 1, 32>}, {pipeline_mode = #tpu.pipeline_mode<synchronous>, transform_indices = @transform_2, window_bounds = array<i64: 1, 32>}, {pipeline_mode = #tpu.pipeline_mode<synchronous>, transform_indices = @transform_3, window_bounds = array<i64: 32, 32>}, {pipeline_mode = #tpu.pipeline_mode<synchronous>, transform_indices = @transform_4, window_bounds = array<i64: 1, 32>}, {pipeline_mode = #tpu.pipeline_mode<synchronous>, transform_indices = @transform_5, window_bounds = array<i64: 32, 32>}, {pipeline_mode = #tpu.pipeline_mode<synchronous>, transform_indices = @transform_6, window_bounds = array<i64: 1, 32>}, {pipeline_mode = #tpu.pipeline_mode<synchronous>, transform_indices = @transform_7, window_bounds = array<i64: 32, 32>}, {pipeline_mode = #tpu.pipeline_mode<synchronous>, transform_indices = @transform_8, window_bounds = array<i64: 1, 32>}, {pipeline_mode = #tpu.pipeline_mode<synchronous>, transform_indices = @transform_9, window_bounds = array<i64: 32, 32>}, {pipeline_mode = #tpu.pipeline_mode<synchronous>, transform_indices = @transform_10, window_bounds = array<i64: 1, 32>}, {pipeline_mode = #tpu.pipeline_mode<synchronous>, transform_indices = @transform_11, window_bounds = array<i64: 1, 32>}, {pipeline_mode = #tpu.pipeline_mode<synchronous>, transform_indices = @transform_12, window_bounds = array<i64: 1, 32>}, {pipeline_mode = #tpu.pipeline_mode<synchronous>, transform_indices = @transform_13, window_bounds = array<i64: 32, 512>}, {pipeline_mode = #tpu.pipeline_mode<synchronous>, transform_indices = @transform_14, window_bounds = array<i64: 1, 512>}, {pipeline_mode = #tpu.pipeline_mode<synchronous>, transform_indices = @transform_15, window_bounds = array<i64: 512, 32>}, {pipeline_mode = #tpu.pipeline_mode<synchronous>, transform_indices = @transform_16, window_bounds = array<i64: 1, 32>}, {transform_indices = @transform_17, window_bounds = array<i64: 1, 8, 32>}]} {
    %c0 = arith.constant 0 : index
    %c0_0 = arith.constant 0 : index
    %c0_1 = arith.constant 0 : index
    %0 = vector.load %arg1[%c0, %c0_0, %c0_1] : memref<1x8x32xf32, #tpu.memory_space<vmem>>, vector<1x8x32xf32>
    %1 = vector.shape_cast %0 : vector<1x8x32xf32> to vector<8x32xf32>
    %cst = arith.constant dense<0.000000e+00> : vector<8xf32>
    %2 = vector.multi_reduction <add>, %1, %cst [1] : vector<8x32xf32> to vector<8xf32>
    %3 = vector.shape_cast %2 : vector<8xf32> to vector<8x1xf32>
    %cst_2 = arith.constant 3.200000e+01 : f32
    %4 = vector.broadcast %cst_2 : f32 to vector<8x1xf32>
    %5 = arith.divf %3, %4 : vector<8x1xf32>
    %6 = vector.broadcast %5 : vector<8x1xf32> to vector<8x32xf32>
    %7 = arith.subf %1, %6 : vector<8x32xf32>
    %8 = arith.mulf %7, %7 : vector<8x32xf32>
    %cst_3 = arith.constant dense<0.000000e+00> : vector<8xf32>
    %9 = vector.multi_reduction <add>, %8, %cst_3 [1] : vector<8x32xf32> to vector<8xf32>
    %10 = vector.shape_cast %9 : vector<8xf32> to vector<8x1xf32>
    %cst_4 = arith.constant 0.0322580636 : f32
    %11 = vector.broadcast %cst_4 : f32 to vector<8x1xf32>
    %12 = arith.mulf %10, %11 : vector<8x1xf32>
    %c0_5 = arith.constant 0 : index
    %c0_6 = arith.constant 0 : index
    %13 = vector.load %arg2[%c0_5, %c0_6] : memref<1x32xf32, #tpu.memory_space<vmem>>, vector<1x32xf32>
    %14 = vector.broadcast %13 : vector<1x32xf32> to vector<8x32xf32>
    %15 = arith.mulf %14, %7 : vector<8x32xf32>
    %16 = math.sqrt %12 : vector<8x1xf32>
    %cst_7 = arith.constant 9.99999997E-7 : f32
    %17 = vector.broadcast %cst_7 : f32 to vector<8x1xf32>
    %18 = arith.addf %16, %17 : vector<8x1xf32>
    %19 = tpu.reciprocal %18 : vector<8x1xf32> -> vector<8x1xf32>
    %20 = vector.broadcast %19 : vector<8x1xf32> to vector<8x32xf32>
    %21 = arith.mulf %15, %20 : vector<8x32xf32>
    %c0_8 = arith.constant 0 : index
    %c0_9 = arith.constant 0 : index
    %22 = vector.load %arg3[%c0_8, %c0_9] : memref<1x32xf32, #tpu.memory_space<vmem>>, vector<1x32xf32>
    %23 = vector.broadcast %22 : vector<1x32xf32> to vector<8x32xf32>
    %24 = arith.addf %21, %23 : vector<8x32xf32>
    %25 = arith.truncf %24 : vector<8x32xf32> to vector<8x32xbf16>
    %c0_10 = arith.constant 0 : index
    %c0_11 = arith.constant 0 : index
    %26 = vector.load %arg4[%c0_10, %c0_11] : memref<32x32xbf16, #tpu.memory_space<vmem>>, vector<32x32xbf16>
    %cst_12 = arith.constant dense<0.000000e+00> : vector<8x32xf32>
    %27 = tpu.matmul %25, %26, %cst_12 {dimension_numbers = #tpu.dot_dimension_numbers<[1], [0], [0], [1], [0, 0, 1, 1], [], []>} : vector<8x32xbf16>, vector<32x32xbf16>, vector<8x32xf32> -> vector<8x32xf32>
    %c0_13 = arith.constant 0 : index
    %c0_14 = arith.constant 0 : index
    %28 = vector.load %arg5[%c0_13, %c0_14] : memref<1x32xf32, #tpu.memory_space<vmem>>, vector<1x32xf32>
    %29 = vector.broadcast %28 : vector<1x32xf32> to vector<8x32xf32>
    %30 = arith.addf %27, %29 : vector<8x32xf32>
    %c0_15 = arith.constant 0 : index
    %c0_16 = arith.constant 0 : index
    %31 = vector.load %arg6[%c0_15, %c0_16] : memref<32x32xbf16, #tpu.memory_space<vmem>>, vector<32x32xbf16>
    %cst_17 = arith.constant dense<0.000000e+00> : vector<8x32xf32>
    %32 = tpu.matmul %25, %31, %cst_17 {dimension_numbers = #tpu.dot_dimension_numbers<[1], [0], [0], [1], [0, 0, 1, 1], [], []>} : vector<8x32xbf16>, vector<32x32xbf16>, vector<8x32xf32> -> vector<8x32xf32>
    %c0_18 = arith.constant 0 : index
    %c0_19 = arith.constant 0 : index
    %33 = vector.load %arg7[%c0_18, %c0_19] : memref<1x32xf32, #tpu.memory_space<vmem>>, vector<1x32xf32>
    %34 = vector.broadcast %33 : vector<1x32xf32> to vector<8x32xf32>
    %35 = arith.addf %32, %34 : vector<8x32xf32>
    %c0_20 = arith.constant 0 : index
    %c0_21 = arith.constant 0 : index
    %36 = vector.load %arg8[%c0_20, %c0_21] : memref<32x32xbf16, #tpu.memory_space<vmem>>, vector<32x32xbf16>
    %cst_22 = arith.constant dense<0.000000e+00> : vector<8x32xf32>
    %37 = tpu.matmul %25, %36, %cst_22 {dimension_numbers = #tpu.dot_dimension_numbers<[1], [0], [0], [1], [0, 0, 1, 1], [], []>} : vector<8x32xbf16>, vector<32x32xbf16>, vector<8x32xf32> -> vector<8x32xf32>
    %c0_23 = arith.constant 0 : index
    %c0_24 = arith.constant 0 : index
    %38 = vector.load %arg9[%c0_23, %c0_24] : memref<1x32xf32, #tpu.memory_space<vmem>>, vector<1x32xf32>
    %39 = vector.broadcast %38 : vector<1x32xf32> to vector<8x32xf32>
    %40 = arith.addf %37, %39 : vector<8x32xf32>
    %41 = vector.shape_cast %30 : vector<8x32xf32> to vector<1x8x32xf32>
    %42 = arith.truncf %41 : vector<1x8x32xf32> to vector<1x8x32xbf16>
    %43 = vector.shape_cast %35 : vector<8x32xf32> to vector<1x8x32xf32>
    %44 = arith.truncf %43 : vector<1x8x32xf32> to vector<1x8x32xbf16>
    %45 = vector.shape_cast %40 : vector<8x32xf32> to vector<1x8x32xf32>
    %46 = arith.truncf %45 : vector<1x8x32xf32> to vector<1x8x32xbf16>
    %47 = vector.extract_strided_slice %42 {offsets = [0, 0, 0], sizes = [1, 8, 8], strides = [1, 1, 1]} : vector<1x8x32xbf16> to vector<1x8x8xbf16>
    %48 = vector.extract_strided_slice %44 {offsets = [0, 0, 0], sizes = [1, 8, 8], strides = [1, 1, 1]} : vector<1x8x32xbf16> to vector<1x8x8xbf16>
    %49 = vector.extract_strided_slice %46 {offsets = [0, 0, 0], sizes = [1, 8, 8], strides = [1, 1, 1]} : vector<1x8x32xbf16> to vector<1x8x8xbf16>
    "tpu.trace_start"() <{level = 10 : i32, message = "bqd,bkd->bqk"}> : () -> ()
    %cst_25 = arith.constant dense<0.000000e+00> : vector<1x8x8xf32>
    %50 = tpu.matmul %47, %48, %cst_25 {dimension_numbers = #tpu.dot_dimension_numbers<[2], [2], [1], [1], [0, 0, 0, 1, 1, 1], [0], [0]>} : vector<1x8x8xbf16>, vector<1x8x8xbf16>, vector<1x8x8xf32> -> vector<1x8x8xf32>
    "tpu.trace_stop"() : () -> ()
    %cst_26 = arith.constant 0.353553385 : f32
    %51 = vector.broadcast %cst_26 : f32 to vector<1x8x8xf32>
    %52 = arith.mulf %50, %51 : vector<1x8x8xf32>
    %cst_27 = arith.constant dense<0xFF800000> : vector<1x8xf32>
    %53 = vector.multi_reduction <maximumf>, %52, %cst_27 [2] : vector<1x8x8xf32> to vector<1x8xf32>
    %54 = vector.shape_cast %53 : vector<1x8xf32> to vector<1x8x1xf32>
    %55 = vector.broadcast %54 : vector<1x8x1xf32> to vector<1x8x8xf32>
    %56 = arith.subf %52, %55 : vector<1x8x8xf32>
    %57 = math.exp %56 : vector<1x8x8xf32>
    %cst_28 = arith.constant dense<0.000000e+00> : vector<1x8xf32>
    %58 = vector.multi_reduction <add>, %57, %cst_28 [2] : vector<1x8x8xf32> to vector<1x8xf32>
    %59 = vector.shape_cast %58 : vector<1x8xf32> to vector<1x8x1xf32>
    %60 = tpu.reciprocal %59 {approx = true} : vector<1x8x1xf32> -> vector<1x8x1xf32>
    %61 = vector.broadcast %60 : vector<1x8x1xf32> to vector<1x8x8xf32>
    %62 = arith.mulf %57, %61 : vector<1x8x8xf32>
    %63 = arith.truncf %62 : vector<1x8x8xf32> to vector<1x8x8xbf16>
    "tpu.trace_start"() <{level = 10 : i32, message = "bqk,bkd->bqd"}> : () -> ()
    %cst_29 = arith.constant dense<0.000000e+00> : vector<1x8x8xf32>
    %64 = tpu.matmul %63, %49, %cst_29 {dimension_numbers = #tpu.dot_dimension_numbers<[2], [1], [1], [2], [0, 0, 0, 1, 1, 2], [0], [0]>} : vector<1x8x8xbf16>, vector<1x8x8xbf16>, vector<1x8x8xf32> -> vector<1x8x8xf32>
    "tpu.trace_stop"() : () -> ()
    %65 = vector.extract_strided_slice %42 {offsets = [0, 0, 8], sizes = [1, 8, 8], strides = [1, 1, 1]} : vector<1x8x32xbf16> to vector<1x8x8xbf16>
    %66 = vector.extract_strided_slice %44 {offsets = [0, 0, 8], sizes = [1, 8, 8], strides = [1, 1, 1]} : vector<1x8x32xbf16> to vector<1x8x8xbf16>
    %67 = vector.extract_strided_slice %46 {offsets = [0, 0, 8], sizes = [1, 8, 8], strides = [1, 1, 1]} : vector<1x8x32xbf16> to vector<1x8x8xbf16>
    "tpu.trace_start"() <{level = 10 : i32, message = "bqd,bkd->bqk"}> : () -> ()
    %cst_30 = arith.constant dense<0.000000e+00> : vector<1x8x8xf32>
    %68 = tpu.matmul %65, %66, %cst_30 {dimension_numbers = #tpu.dot_dimension_numbers<[2], [2], [1], [1], [0, 0, 0, 1, 1, 1], [0], [0]>} : vector<1x8x8xbf16>, vector<1x8x8xbf16>, vector<1x8x8xf32> -> vector<1x8x8xf32>
    "tpu.trace_stop"() : () -> ()
    %cst_31 = arith.constant 0.353553385 : f32
    %69 = vector.broadcast %cst_31 : f32 to vector<1x8x8xf32>
    %70 = arith.mulf %68, %69 : vector<1x8x8xf32>
    %cst_32 = arith.constant dense<0xFF800000> : vector<1x8xf32>
    %71 = vector.multi_reduction <maximumf>, %70, %cst_32 [2] : vector<1x8x8xf32> to vector<1x8xf32>
    %72 = vector.shape_cast %71 : vector<1x8xf32> to vector<1x8x1xf32>
    %73 = vector.broadcast %72 : vector<1x8x1xf32> to vector<1x8x8xf32>
    %74 = arith.subf %70, %73 : vector<1x8x8xf32>
    %75 = math.exp %74 : vector<1x8x8xf32>
    %cst_33 = arith.constant dense<0.000000e+00> : vector<1x8xf32>
    %76 = vector.multi_reduction <add>, %75, %cst_33 [2] : vector<1x8x8xf32> to vector<1x8xf32>
    %77 = vector.shape_cast %76 : vector<1x8xf32> to vector<1x8x1xf32>
    %78 = tpu.reciprocal %77 {approx = true} : vector<1x8x1xf32> -> vector<1x8x1xf32>
    %79 = vector.broadcast %78 : vector<1x8x1xf32> to vector<1x8x8xf32>
    %80 = arith.mulf %75, %79 : vector<1x8x8xf32>
    %81 = arith.truncf %80 : vector<1x8x8xf32> to vector<1x8x8xbf16>
    "tpu.trace_start"() <{level = 10 : i32, message = "bqk,bkd->bqd"}> : () -> ()
    %cst_34 = arith.constant dense<0.000000e+00> : vector<1x8x8xf32>
    %82 = tpu.matmul %81, %67, %cst_34 {dimension_numbers = #tpu.dot_dimension_numbers<[2], [1], [1], [2], [0, 0, 0, 1, 1, 2], [0], [0]>} : vector<1x8x8xbf16>, vector<1x8x8xbf16>, vector<1x8x8xf32> -> vector<1x8x8xf32>
    "tpu.trace_stop"() : () -> ()
    %83 = vector.extract_strided_slice %42 {offsets = [0, 0, 16], sizes = [1, 8, 8], strides = [1, 1, 1]} : vector<1x8x32xbf16> to vector<1x8x8xbf16>
    %84 = vector.extract_strided_slice %44 {offsets = [0, 0, 16], sizes = [1, 8, 8], strides = [1, 1, 1]} : vector<1x8x32xbf16> to vector<1x8x8xbf16>
    %85 = vector.extract_strided_slice %46 {offsets = [0, 0, 16], sizes = [1, 8, 8], strides = [1, 1, 1]} : vector<1x8x32xbf16> to vector<1x8x8xbf16>
    "tpu.trace_start"() <{level = 10 : i32, message = "bqd,bkd->bqk"}> : () -> ()
    %cst_35 = arith.constant dense<0.000000e+00> : vector<1x8x8xf32>
    %86 = tpu.matmul %83, %84, %cst_35 {dimension_numbers = #tpu.dot_dimension_numbers<[2], [2], [1], [1], [0, 0, 0, 1, 1, 1], [0], [0]>} : vector<1x8x8xbf16>, vector<1x8x8xbf16>, vector<1x8x8xf32> -> vector<1x8x8xf32>
    "tpu.trace_stop"() : () -> ()
    %cst_36 = arith.constant 0.353553385 : f32
    %87 = vector.broadcast %cst_36 : f32 to vector<1x8x8xf32>
    %88 = arith.mulf %86, %87 : vector<1x8x8xf32>
    %cst_37 = arith.constant dense<0xFF800000> : vector<1x8xf32>
    %89 = vector.multi_reduction <maximumf>, %88, %cst_37 [2] : vector<1x8x8xf32> to vector<1x8xf32>
    %90 = vector.shape_cast %89 : vector<1x8xf32> to vector<1x8x1xf32>
    %91 = vector.broadcast %90 : vector<1x8x1xf32> to vector<1x8x8xf32>
    %92 = arith.subf %88, %91 : vector<1x8x8xf32>
    %93 = math.exp %92 : vector<1x8x8xf32>
    %cst_38 = arith.constant dense<0.000000e+00> : vector<1x8xf32>
    %94 = vector.multi_reduction <add>, %93, %cst_38 [2] : vector<1x8x8xf32> to vector<1x8xf32>
    %95 = vector.shape_cast %94 : vector<1x8xf32> to vector<1x8x1xf32>
    %96 = tpu.reciprocal %95 {approx = true} : vector<1x8x1xf32> -> vector<1x8x1xf32>
    %97 = vector.broadcast %96 : vector<1x8x1xf32> to vector<1x8x8xf32>
    %98 = arith.mulf %93, %97 : vector<1x8x8xf32>
    %99 = arith.truncf %98 : vector<1x8x8xf32> to vector<1x8x8xbf16>
    "tpu.trace_start"() <{level = 10 : i32, message = "bqk,bkd->bqd"}> : () -> ()
    %cst_39 = arith.constant dense<0.000000e+00> : vector<1x8x8xf32>
    %100 = tpu.matmul %99, %85, %cst_39 {dimension_numbers = #tpu.dot_dimension_numbers<[2], [1], [1], [2], [0, 0, 0, 1, 1, 2], [0], [0]>} : vector<1x8x8xbf16>, vector<1x8x8xbf16>, vector<1x8x8xf32> -> vector<1x8x8xf32>
    "tpu.trace_stop"() : () -> ()
    %101 = vector.extract_strided_slice %42 {offsets = [0, 0, 24], sizes = [1, 8, 8], strides = [1, 1, 1]} : vector<1x8x32xbf16> to vector<1x8x8xbf16>
    %102 = vector.extract_strided_slice %44 {offsets = [0, 0, 24], sizes = [1, 8, 8], strides = [1, 1, 1]} : vector<1x8x32xbf16> to vector<1x8x8xbf16>
    %103 = vector.extract_strided_slice %46 {offsets = [0, 0, 24], sizes = [1, 8, 8], strides = [1, 1, 1]} : vector<1x8x32xbf16> to vector<1x8x8xbf16>
    "tpu.trace_start"() <{level = 10 : i32, message = "bqd,bkd->bqk"}> : () -> ()
    %cst_40 = arith.constant dense<0.000000e+00> : vector<1x8x8xf32>
    %104 = tpu.matmul %101, %102, %cst_40 {dimension_numbers = #tpu.dot_dimension_numbers<[2], [2], [1], [1], [0, 0, 0, 1, 1, 1], [0], [0]>} : vector<1x8x8xbf16>, vector<1x8x8xbf16>, vector<1x8x8xf32> -> vector<1x8x8xf32>
    "tpu.trace_stop"() : () -> ()
    %cst_41 = arith.constant 0.353553385 : f32
    %105 = vector.broadcast %cst_41 : f32 to vector<1x8x8xf32>
    %106 = arith.mulf %104, %105 : vector<1x8x8xf32>
    %cst_42 = arith.constant dense<0xFF800000> : vector<1x8xf32>
    %107 = vector.multi_reduction <maximumf>, %106, %cst_42 [2] : vector<1x8x8xf32> to vector<1x8xf32>
    %108 = vector.shape_cast %107 : vector<1x8xf32> to vector<1x8x1xf32>
    %109 = vector.broadcast %108 : vector<1x8x1xf32> to vector<1x8x8xf32>
    %110 = arith.subf %106, %109 : vector<1x8x8xf32>
    %111 = math.exp %110 : vector<1x8x8xf32>
    %cst_43 = arith.constant dense<0.000000e+00> : vector<1x8xf32>
    %112 = vector.multi_reduction <add>, %111, %cst_43 [2] : vector<1x8x8xf32> to vector<1x8xf32>
    %113 = vector.shape_cast %112 : vector<1x8xf32> to vector<1x8x1xf32>
    %114 = tpu.reciprocal %113 {approx = true} : vector<1x8x1xf32> -> vector<1x8x1xf32>
    %115 = vector.broadcast %114 : vector<1x8x1xf32> to vector<1x8x8xf32>
    %116 = arith.mulf %111, %115 : vector<1x8x8xf32>
    %117 = arith.truncf %116 : vector<1x8x8xf32> to vector<1x8x8xbf16>
    "tpu.trace_start"() <{level = 10 : i32, message = "bqk,bkd->bqd"}> : () -> ()
    %cst_44 = arith.constant dense<0.000000e+00> : vector<1x8x8xf32>
    %118 = tpu.matmul %117, %103, %cst_44 {dimension_numbers = #tpu.dot_dimension_numbers<[2], [1], [1], [2], [0, 0, 0, 1, 1, 2], [0], [0]>} : vector<1x8x8xbf16>, vector<1x8x8xbf16>, vector<1x8x8xf32> -> vector<1x8x8xf32>
    "tpu.trace_stop"() : () -> ()
    %119 = tpu.concatenate %64, %82, %100, %118 in 2 : vector<1x8x8xf32>, vector<1x8x8xf32>, vector<1x8x8xf32>, vector<1x8x8xf32> -> vector<1x8x32xf32>
    %120 = vector.shape_cast %119 : vector<1x8x32xf32> to vector<8x32xf32>
    %121 = arith.truncf %120 : vector<8x32xf32> to vector<8x32xbf16>
    %c0_45 = arith.constant 0 : index
    %c0_46 = arith.constant 0 : index
    %122 = vector.load %arg10[%c0_45, %c0_46] : memref<32x32xbf16, #tpu.memory_space<vmem>>, vector<32x32xbf16>
    %cst_47 = arith.constant dense<0.000000e+00> : vector<8x32xf32>
    %123 = tpu.matmul %121, %122, %cst_47 {dimension_numbers = #tpu.dot_dimension_numbers<[1], [0], [0], [1], [0, 0, 1, 1], [], []>} : vector<8x32xbf16>, vector<32x32xbf16>, vector<8x32xf32> -> vector<8x32xf32>
    %c0_48 = arith.constant 0 : index
    %c0_49 = arith.constant 0 : index
    %124 = vector.load %arg11[%c0_48, %c0_49] : memref<1x32xf32, #tpu.memory_space<vmem>>, vector<1x32xf32>
    %125 = vector.broadcast %124 : vector<1x32xf32> to vector<8x32xf32>
    %126 = arith.addf %123, %125 : vector<8x32xf32>
    %127 = arith.addf %1, %126 : vector<8x32xf32>
    %cst_50 = arith.constant dense<0.000000e+00> : vector<8xf32>
    %128 = vector.multi_reduction <add>, %127, %cst_50 [1] : vector<8x32xf32> to vector<8xf32>
    %129 = vector.shape_cast %128 : vector<8xf32> to vector<8x1xf32>
    %cst_51 = arith.constant 3.200000e+01 : f32
    %130 = vector.broadcast %cst_51 : f32 to vector<8x1xf32>
    %131 = arith.divf %129, %130 : vector<8x1xf32>
    %132 = vector.broadcast %131 : vector<8x1xf32> to vector<8x32xf32>
    %133 = arith.subf %127, %132 : vector<8x32xf32>
    %134 = arith.mulf %133, %133 : vector<8x32xf32>
    %cst_52 = arith.constant dense<0.000000e+00> : vector<8xf32>
    %135 = vector.multi_reduction <add>, %134, %cst_52 [1] : vector<8x32xf32> to vector<8xf32>
    %136 = vector.shape_cast %135 : vector<8xf32> to vector<8x1xf32>
    %cst_53 = arith.constant 0.0322580636 : f32
    %137 = vector.broadcast %cst_53 : f32 to vector<8x1xf32>
    %138 = arith.mulf %136, %137 : vector<8x1xf32>
    %c0_54 = arith.constant 0 : index
    %c0_55 = arith.constant 0 : index
    %139 = vector.load %arg12[%c0_54, %c0_55] : memref<1x32xf32, #tpu.memory_space<vmem>>, vector<1x32xf32>
    %140 = vector.broadcast %139 : vector<1x32xf32> to vector<8x32xf32>
    %141 = arith.mulf %140, %133 : vector<8x32xf32>
    %142 = math.sqrt %138 : vector<8x1xf32>
    %cst_56 = arith.constant 9.99999997E-7 : f32
    %143 = vector.broadcast %cst_56 : f32 to vector<8x1xf32>
    %144 = arith.addf %142, %143 : vector<8x1xf32>
    %145 = tpu.reciprocal %144 : vector<8x1xf32> -> vector<8x1xf32>
    %146 = vector.broadcast %145 : vector<8x1xf32> to vector<8x32xf32>
    %147 = arith.mulf %141, %146 : vector<8x32xf32>
    %c0_57 = arith.constant 0 : index
    %c0_58 = arith.constant 0 : index
    %148 = vector.load %arg13[%c0_57, %c0_58] : memref<1x32xf32, #tpu.memory_space<vmem>>, vector<1x32xf32>
    %149 = vector.broadcast %148 : vector<1x32xf32> to vector<8x32xf32>
    %150 = arith.addf %147, %149 : vector<8x32xf32>
    %151 = arith.truncf %150 : vector<8x32xf32> to vector<8x32xbf16>
    %c0_59 = arith.constant 0 : index
    %c0_60 = arith.constant 0 : index
    %152 = vector.load %arg14[%c0_59, %c0_60] : memref<32x512xbf16, #tpu.memory_space<vmem>>, vector<32x512xbf16>
    %cst_61 = arith.constant dense<0.000000e+00> : vector<8x512xf32>
    %153 = tpu.matmul %151, %152, %cst_61 {dimension_numbers = #tpu.dot_dimension_numbers<[1], [0], [0], [1], [0, 0, 1, 1], [], []>} : vector<8x32xbf16>, vector<32x512xbf16>, vector<8x512xf32> -> vector<8x512xf32>
    %c0_62 = arith.constant 0 : index
    %c0_63 = arith.constant 0 : index
    %154 = vector.load %arg15[%c0_62, %c0_63] : memref<1x512xf32, #tpu.memory_space<vmem>>, vector<1x512xf32>
    %155 = vector.broadcast %154 : vector<1x512xf32> to vector<8x512xf32>
    %156 = arith.addf %153, %155 : vector<8x512xf32>
    %cst_64 = arith.constant 0.000000e+00 : f32
    %157 = vector.broadcast %cst_64 : f32 to vector<8x512xf32>
    %158 = arith.maximumf %156, %157 : vector<8x512xf32>
    %159 = arith.truncf %158 : vector<8x512xf32> to vector<8x512xbf16>
    %c0_65 = arith.constant 0 : index
    %c0_66 = arith.constant 0 : index
    %160 = vector.load %arg16[%c0_65, %c0_66] : memref<512x32xbf16, #tpu.memory_space<vmem>>, vector<512x32xbf16>
    %cst_67 = arith.constant dense<0.000000e+00> : vector<8x32xf32>
    %161 = tpu.matmul %159, %160, %cst_67 {dimension_numbers = #tpu.dot_dimension_numbers<[1], [0], [0], [1], [0, 0, 1, 1], [], []>} : vector<8x512xbf16>, vector<512x32xbf16>, vector<8x32xf32> -> vector<8x32xf32>
    %c0_68 = arith.constant 0 : index
    %c0_69 = arith.constant 0 : index
    %162 = vector.load %arg17[%c0_68, %c0_69] : memref<1x32xf32, #tpu.memory_space<vmem>>, vector<1x32xf32>
    %163 = vector.broadcast %162 : vector<1x32xf32> to vector<8x32xf32>
    %164 = arith.addf %161, %163 : vector<8x32xf32>
    %165 = arith.addf %127, %164 : vector<8x32xf32>
    %166 = vector.shape_cast %165 : vector<8x32xf32> to vector<1x8x32xf32>
    %c0_70 = arith.constant 0 : index
    %c0_71 = arith.constant 0 : index
    %c0_72 = arith.constant 0 : index
    %167 = vector.load %arg18[%c0_70, %c0_71, %c0_72] : memref<1x8x32xf32, #tpu.memory_space<vmem>>, vector<1x8x32xf32>
    tpu.vector_store %arg18[%c0_70, %c0_71, %c0_72], %166 {strides = array<i32>} : memref<1x8x32xf32, #tpu.memory_space<vmem>>, vector<1x8x32xf32>,
    return
  }
  func.func @transform_0(%arg0: i32) -> (i32, i32, i32) {
    %c0_i32 = arith.constant 0 : i32
    %c0_i32_0 = arith.constant 0 : i32
    %c0_i32_1 = arith.constant 0 : i32
    return %arg0, %c0_i32, %c0_i32_0 : i32, i32, i32
  }
  func.func @transform_1(%arg0: i32) -> (i32, i32) {
    %c0_i32 = arith.constant 0 : i32
    %c0_i32_0 = arith.constant 0 : i32
    %c0_i32_1 = arith.constant 0 : i32
    return %c0_i32, %c0_i32_0 : i32, i32
  }
  func.func @transform_2(%arg0: i32) -> (i32, i32) {
    %c0_i32 = arith.constant 0 : i32
    %c0_i32_0 = arith.constant 0 : i32
    %c0_i32_1 = arith.constant 0 : i32
    return %c0_i32, %c0_i32_0 : i32, i32
  }
  func.func @transform_3(%arg0: i32) -> (i32, i32) {
    %c0_i32 = arith.constant 0 : i32
    %c0_i32_0 = arith.constant 0 : i32
    %c0_i32_1 = arith.constant 0 : i32
    return %c0_i32, %c0_i32_0 : i32, i32
  }
  func.func @transform_4(%arg0: i32) -> (i32, i32) {
    %c0_i32 = arith.constant 0 : i32
    %c0_i32_0 = arith.constant 0 : i32
    %c0_i32_1 = arith.constant 0 : i32
    return %c0_i32, %c0_i32_0 : i32, i32
  }
  func.func @transform_5(%arg0: i32) -> (i32, i32) {
    %c0_i32 = arith.constant 0 : i32
    %c0_i32_0 = arith.constant 0 : i32
    %c0_i32_1 = arith.constant 0 : i32
    return %c0_i32, %c0_i32_0 : i32, i32
  }
  func.func @transform_6(%arg0: i32) -> (i32, i32) {
    %c0_i32 = arith.constant 0 : i32
    %c0_i32_0 = arith.constant 0 : i32
    %c0_i32_1 = arith.constant 0 : i32
    return %c0_i32, %c0_i32_0 : i32, i32
  }
  func.func @transform_7(%arg0: i32) -> (i32, i32) {
    %c0_i32 = arith.constant 0 : i32
    %c0_i32_0 = arith.constant 0 : i32
    %c0_i32_1 = arith.constant 0 : i32
    return %c0_i32, %c0_i32_0 : i32, i32
  }
  func.func @transform_8(%arg0: i32) -> (i32, i32) {
    %c0_i32 = arith.constant 0 : i32
    %c0_i32_0 = arith.constant 0 : i32
    %c0_i32_1 = arith.constant 0 : i32
    return %c0_i32, %c0_i32_0 : i32, i32
  }
  func.func @transform_9(%arg0: i32) -> (i32, i32) {
    %c0_i32 = arith.constant 0 : i32
    %c0_i32_0 = arith.constant 0 : i32
    %c0_i32_1 = arith.constant 0 : i32
    return %c0_i32, %c0_i32_0 : i32, i32
  }
  func.func @transform_10(%arg0: i32) -> (i32, i32) {
    %c0_i32 = arith.constant 0 : i32
    %c0_i32_0 = arith.constant 0 : i32
    %c0_i32_1 = arith.constant 0 : i32
    return %c0_i32, %c0_i32_0 : i32, i32
  }
  func.func @transform_11(%arg0: i32) -> (i32, i32) {
    %c0_i32 = arith.constant 0 : i32
    %c0_i32_0 = arith.constant 0 : i32
    %c0_i32_1 = arith.constant 0 : i32
    return %c0_i32, %c0_i32_0 : i32, i32
  }
  func.func @transform_12(%arg0: i32) -> (i32, i32) {
    %c0_i32 = arith.constant 0 : i32
    %c0_i32_0 = arith.constant 0 : i32
    %c0_i32_1 = arith.constant 0 : i32
    return %c0_i32, %c0_i32_0 : i32, i32
  }
  func.func @transform_13(%arg0: i32) -> (i32, i32) {
    %c0_i32 = arith.constant 0 : i32
    %c0_i32_0 = arith.constant 0 : i32
    %c0_i32_1 = arith.constant 0 : i32
    return %c0_i32, %c0_i32_0 : i32, i32
  }
  func.func @transform_14(%arg0: i32) -> (i32, i32) {
    %c0_i32 = arith.constant 0 : i32
    %c0_i32_0 = arith.constant 0 : i32
    %c0_i32_1 = arith.constant 0 : i32
    return %c0_i32, %c0_i32_0 : i32, i32
  }
  func.func @transform_15(%arg0: i32) -> (i32, i32) {
    %c0_i32 = arith.constant 0 : i32
    %c0_i32_0 = arith.constant 0 : i32
    %c0_i32_1 = arith.constant 0 : i32
    return %c0_i32, %c0_i32_0 : i32, i32
  }
  func.func @transform_16(%arg0: i32) -> (i32, i32) {
    %c0_i32 = arith.constant 0 : i32
    %c0_i32_0 = arith.constant 0 : i32
    %c0_i32_1 = arith.constant 0 : i32
    return %c0_i32, %c0_i32_0 : i32, i32
  }
  func.func @transform_17(%arg0: i32) -> (i32, i32, i32) {
    %c0_i32 = arith.constant 0 : i32
    %c0_i32_0 = arith.constant 0 : i32
    %c0_i32_1 = arith.constant 0 : i32
    return %arg0, %c0_i32, %c0_i32_0 : i32, i32, i32
  }
}

</mosaic_0001>

<bundles_post_ra>
// kernel: connection_forward.19
= control target key start
LH: loop header
LB: loop body
LE: loop exit
PB: predicated region body
PF: predicated region fallthrough
CT: control target
= control target key end

     0   :  { %v151_v1 = vmov 0.0   ;;  %vm152_vm0 = vmmov 0   ;;  %s203_s0 = inlined_call_operand.vmem [shape: f32[16,32], index: 0, kind: input, shape index: {}]   ;;  %s204_s1 = inlined_call_operand.vmem [shape: bf16[32,32], index: 1, kind: input, shape index: {}]   ;;  %s205_s2 = inlined_call_operand.vmem [shape: f32[1,32], index: 2, kind: input, shape index: {}]   ;;  %s206_s3 = inlined_call_operand.hbm [shape: f32[16,32], index: 3, kind: output, shape index: {}]  }
   0x1   :  { %v125_v0 = vld [vmem:[%s204_s1] sm:$0xff]   ;;  %112 = vmatprep.subr.bf16.mxu0 %v151_v1  ;;  %v126_v2 = vld [vmem:[%s204_s1 + $0x8] sm:$0xff]   ;;  %116 = vmatprep.mubr.msk.bf16.mxu0 %vm152_vm0, %v151_v1 }
   0x2   :  { %113 = vmatpush3.bf16.msra.mxu0 %v125_v0  ;;  %v16_v3 = vld [vmem:[%s203_s0] sm:$0xff]  ;;  %v17_v4 = vld [vmem:[%s203_s0 + $0x8] sm:$0xff] }
   0x3   :  { %114 = vmatprep.subr.bf16.mxu0 %v151_v1 }
   0x4   :  { %8 = vsyncpa [#allocation3], 0  ;;  %v18_v5 = vpack.c.bf16 %v17_v4, %v16_v3  ;;  %vm42_vm1 = vcmask 261120   ;;  %v105_v6 = vld [vmem:[%s205_s2] ss:$0 sm:$0xff]  ;;  %s153_s1 = smov [#allocation2]  }
   0x5   :  { %s94_s22 = sshll.u32 %s153_s1, 4  ;;  %s95_s22 = int_to_ptr.vmem [resolvable:$true] %s94_s22 }
   0x6   :  { %115 = vmatpush3.bf16.msra.mxu0 %v126_v2  ;;  %s127_s0 = scalar_lea.vmem %s95_s22, 256  ;;  %p132_p1 = scmp.lt.s32.totalorder %s95_s22, %s95_s22 }
   0x7   :  { %p128_p0 = scmp.ne.s32.totalorder %s95_s22, %s127_s0  ;;  %p133_p2 = scmp.lt.s32.totalorder %s127_s0, %s127_s0 }
   0x9   :  { %117 = vmatmul.mubr.msk.bf16.vlgmr.msra.gmra.mrb[0].mxu0 %vm42_vm1, %v18_v5  ;;  %p134_p3 = por %p133_p2, %p132_p1 }
   0xb   :  { %p135_p4 = pnand %p134_p3, %p128_p0 }
  0xdc   :  { %v80_v7 = vpop.f32.mrb[0].mxu0 }
  0xdd   :  { %v81_v8 = vadd.f32 %v105_v6, %v80_v7  ;;  %v118_v9 = vpop.f32.mrb[1].mxu0 }
  0xde   :  { %v83_v10 = vpop.f32.mrb[2].mxu0 }
  0xdf   :  { %87 = vst.msk [vmem:[#allocation2] sm:$0xff] %vm42_vm1, %v81_v8  ;;  %v84_v11 = vadd.f32 %v105_v6, %v83_v10  ;;  %v119_v12 = vpop.f32.mrb[3].mxu0 }
  0xe1   :  { %88 = vst.msk [vmem:[#allocation2 + $0x8] sm:$0xff] %vm42_vm1, %v84_v11 }
  0xe2   :  { %138 = shalt.err (!%p135_p4)
}
  0xe3   :  { %s139_s24 = scalar_lea.hbm %s206_s3, 256 }
  0xe4   :  { %p140_p5 = scmp.ne.s32.totalorder %s206_s3, %s139_s24  ;;  %p143_p6 = scmp.lt.u32.totalorder %s139_s24, %s206_s3 }
  0xe6   :  { %p145_p7 = pnand %p143_p6, %p140_p5 }
  0xe8   :  { %148 = shalt.err (!%p145_p7)
}
  0xe9   :  { %s154_s29 = smov 128   ;;  %s155_s30 = smov 8  }
  0xea   :  { %100 = dma.vmem_to_hbm [thread:$0]  %s95_s22, 256, %s206_s3, [#allocation3], %s154_s29, %s154_s29, %s155_s30  }
  0xeb   :  { %149 = dma.done.wait [#allocation3], 256  }
  0xec   :  { %150 = vsyncadd [#allocation3], 4294967040 }
  0xed   :  { %104 = vsyncpa [#allocation3], 1 }

// kernel: connection_forward.10
= control target key start
LH: loop header
LB: loop body
LE: loop exit
PB: predicated region body
PF: predicated region fallthrough
CT: control target
= control target key end

     0   :  { %s2338_s24 = smov 0   ;;  %s2637_s0 = inlined_call_operand.vmem [shape: f32[2,8,32], index: 0, kind: input, shape index: {}]   ;;  %s2638_s1 = inlined_call_operand.vmem [shape: f32[1,32], index: 1, kind: input, shape index: {}]   ;;  %s2639_s2 = inlined_call_operand.vmem [shape: f32[1,32], index: 2, kind: input, shape index: {}]   ;;  %s2640_s3 = inlined_call_operand.vmem [shape: bf16[32,32], index: 3, kind: input, shape index: {}]   ;;  %s2641_s4 = inlined_call_operand.vmem [shape: f32[1,32], index: 4, kind: input, shape index: {}]   ;;  %s2642_s5 = inlined_call_operand.vmem [shape: bf16[32,32], index: 5, kind: input, shape index: {}]   ;;  %s2643_s6 = inlined_call_operand.vmem [shape: f32[1,32], index: 6, kind: input, shape index: {}]   ;;  %s2644_s7 = inlined_call_operand.vmem [shape: bf16[32,32], index: 7, kind: input, shape index: {}]   ;;  %s2645_s8 = inlined_call_operand.vmem [shape: f32[1,32], index: 8, kind: input, shape index: {}]   ;;  %s2646_s9 = inlined_call_operand.vmem [shape: bf16[32,32], index: 9, kind: input, shape index: {}]   ;;  %s2647_s10 = inlined_call_operand.vmem [shape: f32[1,32], index: 10, kind: input, shape index: {}]   ;;  %s2648_s11 = inlined_call_operand.vmem [shape: f32[1,32], index: 11, kind: input, shape index: {}]   ;;  %s2649_s12 = inlined_call_operand.vmem [shape: f32[1,32], index: 12, kind: input, shape index: {}]   ;;  %s2650_s13 = inlined_call_operand.vmem [shape: bf16[32,512], index: 13, kind: input, shape index: {}]   ;;  %s2651_s14 = inlined_call_operand.vmem [shape: f32[1,512], index: 14, kind: input, shape index: {}]   ;;  %s2652_s15 = inlined_call_operand.vmem [shape: bf16[512,32], index: 15, kind: input, shape index: {}]   ;;  %s2653_s16 = inlined_call_operand.vmem [shape: f32[1,32], index: 16, kind: input, shape index: {}]   ;;  %s2654_s17 = inlined_call_operand.vmem [shape: f32[2,8,32], index: 17, kind: output, shape index: {}]  }
   0x1   :  { %2655 = sst [smem:[#allocation2_spill]] %s2637_s0 }
   0x2   :  { %2656 = sst [smem:[#allocation3_spill]] %s2638_s1 }
   0x3 LB: > { %s1906_s25 = sadd.s32 4294967295, %s2237_s24   ;;  %p1910_p0 = scmp.ge.s32.totalorder %s2237_s24, 1  ;;  %s2237_s24 = sphi %s2338_s24, %s27_s24  }
   0x4   : > { %p486_p1 = scmp.lt.s32.totalorder %s2237_s24, 3 }
   0x6   : > { %p487_p2 = pnand %p1910_p0, %p486_p1 }
   0x7   : > { %p536_p3 = scmp.lt.s32.totalorder (!%p487_p2), %s1906_s25, 1  ;;  %vm546_vm0 = vcmask (!%p487_p2), 261120   ;;  %s2657_s29 = sld [smem:[#allocation2_spill]] (!%p487_p2)  ;;  %v2155_v7 = vld [vmem:[%s2640_s3] sm:$0xff] (!%p487_p2)   ;;  %v2239_v9 = vmov (!%p487_p2), 0.0   ;;  %v2157_v10 = vld [vmem:[%s2640_s3 + $0x8] sm:$0xff] (!%p487_p2)  }
   0x8   : > { %490 = sbr.rel (%p487_p2) target bundleno = 2585 (0xa19), region = 88  ;;  %v2156_v8 = vld [vmem:[%s2642_s5] sm:$0xff] (!%p487_p2)   ;;  %2058 = vmatprep.subr.bf16.mxu0 (!%p487_p2), %v2239_v9  ;;  %2066 = vmatprep.subr.bf16.mxu1 (!%p487_p2), %v2239_v9  ;;  %v2158_v11 = vld [vmem:[%s2642_s5 + $0x8] sm:$0xff] (!%p487_p2)   ;;  %vm2240_vm1 = vmmov (!%p487_p2), 0   ;;  %vm780_vm4 = vcmask (!%p487_p2), 64512   ;;  %s2241_s28 = smov (!%p487_p2), 112  }
   0x9   : > { %2059 = vmatpush3.bf16.msra.mxu0 (!%p487_p2), %v2155_v7  ;;  %2067 = vmatpush3.bf16.msra.mxu1 (!%p487_p2), %v2156_v8  ;;  %v1914_v23 = vld [vmem:[%s2639_s2] ss:$0 sm:$0xff] (!%p487_p2)  ;;  %v2160_v28 = vld [vmem:[%s2644_s7 + $0x8] sm:$0xff] (!%p487_p2)   ;;  %vm843_vm5 = vcmask (!%p487_p2), 1043456   ;;  %s2243_s18 = smov (!%p487_p2), 104   ;;  %s2244_s20 = smov (!%p487_p2), 8  }
   0xa   : > { %2060 = vmatprep.subr.bf16.mxu0 (!%p487_p2), %v2239_v9  ;;  %2068 = vmatprep.subr.bf16.mxu1 (!%p487_p2), %v2239_v9  ;;  %v2159_v26 = vld [vmem:[%s2644_s7] sm:$0xff] (!%p487_p2)   ;;  %s2245_s21 = smov (!%p487_p2), 16   ;;  %s2246_s27 = smov (!%p487_p2), 24   ;;  %vm1236_vm6 = vcmask (!%p487_p2), 130048   ;;  %vm1238_vm7 = vcmask (!%p487_p2), 195584  }
   0xb   : > { %2062 = vmatprep.mubr.msk.bf16.mxu0 (!%p487_p2), %vm2240_vm1, %v2239_v9  ;;  %2070 = vmatprep.mubr.msk.bf16.mxu1 (!%p487_p2), %vm2240_vm1, %v2239_v9  ;;  %v1919_v29 = vld [vmem:[%s2643_s6] ss:$0 sm:$0xff] (!%p487_p2) }
   0xc   : > { %v1915_v30 = vld [vmem:[%s2641_s4] ss:$0 sm:$0xff] (!%p487_p2) }
   0xd   : > { %2061 = vmatpush3.bf16.msra.mxu0 (!%p487_p2), %v2157_v10  ;;  %2069 = vmatpush3.bf16.msra.mxu1 (!%p487_p2), %v2158_v11  ;;  %v1923_v43 = vld [vmem:[%s2645_s8] ss:$0 sm:$0xff] (!%p487_p2) }
   0xe   : > { %2074 = vmatprep.subr.bf16.mxu0 (!%p487_p2), %v2239_v9  ;;  %2082 = vmatprep.subr.bf16.mxu1 (!%p487_p2), %v2239_v9 }
   0xf   : > { %s2660_s25 = smov (!%p536_p3, %s1906_s25), 1 }
  0x10   : > { %s1911_s26 = sshll.u32 %s2660_s25, 3 }
  0x11   : > { %s539_s0 = scalar_lea.vmem %s2657_s29, %s1911_s26  ;;  %s2658_s29 = sld [smem:[#allocation3_spill]] }
  0x12   : > { %v2354_v0 = vld [vmem:[%s539_s0] sm:$0xff] }
  0x13   : > { %v547_v1 = vsel %vm546_vm0, %v2354_v0, 0.0 }
  0x14   : > { %548 = vadd.xlane.f32.xlu0 %v547_v1 }
  0x17   : > { %v1913_v20 = vld [vmem:[%s2658_s29] ss:$0 sm:$0xff]  ;;  %s2242_s29 = smov 120  }
  0xa1   : > { %v549_v2 = vpop.xlane.xlu0 %548 }
  0xa2   : > { %v551_v3 = vmul.f32 0.03125, %v549_v2 }
  0xa4   : > { %v552_v4 = vsub.f32 %v2354_v0, %v551_v3 }
  0xa6   : > { %v553_v5 = vmul.f32 %v552_v4, %v552_v4  ;;  %v565_v21 = vmul.f32 %v1913_v20, %v552_v4 }
  0xa8   : > { %v554_v6 = vsel %vm546_vm0, %v553_v5, 0.0 }
  0xa9   : > { %555 = vadd.xlane.f32.xlu0 %v554_v6 }
 0x136   : > { %v556_v12 = vpop.xlane.xlu0 %555 }
 0x137   : > { %v557_v13 = vmul.f32 0.032258064, %v556_v12 }
 0x139   : > { %2207 = vrsqrt.f32 %v557_v13  ;;  %vm568_vm2 = vcmp.eq.f32.partialorder %v557_v13, inf  ;;  %v571_v16 = vand.u32 2147483648, %v557_v13  ;;  %vm570_vm3 = vcmp.eq.f32.partialorder %v557_v13, 0.0 }
 0x143   : > { %v2208_v14 = vpop.eup %2207 }
 0x144   : > { %v567_v15 = vmul.f32 %v2208_v14, %v557_v13 }
 0x146   : > { %v569_v17 = vsel %vm568_vm2, %v557_v13, %v567_v15 }
 0x147   : > { %v572_v18 = vsel %vm570_vm3, %v571_v16, %v569_v17 }
 0x148   : > { %v573_v19 = vadd.f32 1e-06, %v572_v18 }
 0x14a   : > { %2209 = vrcp.f32 %v573_v19 }
 0x154   : > { %v2210_v22 = vpop.eup %2209 }
 0x155   : > { %v575_v24 = vmul.f32 %v2210_v22, %v565_v21 }
 0x157   : > { %v583_v25 = vadd.f32 %v1914_v23, %v575_v24 }
 0x159   : > { %v584_v27 = vpack.c.bf16 %v583_v25, %v583_v25 }
 0x15b   : > { %2063 = vmatmul.mubr.msk.bf16.vlgmr.msra.gmra.mrb[0].mxu0 %vm546_vm0, %v584_v27  ;;  %2071 = vmatmul.mubr.msk.bf16.vlgmr.msra.gmra.mrb[0].mxu1 %vm546_vm0, %v584_v27 }
 0x15c   : > { %2075 = vmatpush3.bf16.msra.mxu0 %v2159_v26  ;;  %2078 = vmatprep.mubr.msk.bf16.mxu0 %vm2240_vm1, %v2239_v9 }
 0x15d   : > { %2076 = vmatprep.subr.bf16.mxu0 %v2239_v9  ;;  %2084 = vmatprep.mubr.msk.bf16.mxu1 %vm2240_vm1, %v2239_v9 }
 0x160   : > { %2077 = vmatpush3.bf16.msra.mxu0 %v2160_v28 }
 0x161   : > { %2088 = vmatprep.subr.bf16.mxu0 %v2239_v9 }
 0x163   : > { %2079 = vmatmul.mubr.msk.bf16.vlgmr.msra.gmra.mrb[4].mxu0 %vm546_vm0, %v584_v27 }
 0x164   : > { %2090 = vmatprep.mubr.msk.bf16.mxu0 %vm2240_vm1, %v2239_v9 }
 0x22e   : > { %v645_v31 = vpop.f32.mrb[0].mxu0  ;;  %v708_v32 = vpop.f32.mrb[0].mxu1 }
 0x22f   : > { %v709_v33 = vadd.f32 %v1919_v29, %v708_v32  ;;  %v2064_v34 = vpop.f32.mrb[1].mxu0  ;;  %v2072_v35 = vpop.f32.mrb[1].mxu1  ;;  %v646_v38 = vadd.f32 %v1915_v30, %v645_v31 }
 0x230   : > { %v648_v36 = vpop.f32.mrb[2].mxu0  ;;  %v711_v37 = vpop.f32.mrb[2].mxu1 }
 0x231   : > { %v778_v39 = vpack.c.bf16 %v709_v33, %v709_v33  ;;  %v2065_v40 = vpop.f32.mrb[3].mxu0  ;;  %v2073_v41 = vpop.f32.mrb[3].mxu1  ;;  %v777_v44 = vpack.c.bf16 %v646_v38, %v646_v38 }
 0x233   : > { %1003 = vrot.lane.b32.xlu0 %v778_v39, %s2241_s28  ;;  %891 = vrot.lane.b32.xlu1 %v778_v39, %s2242_s29  ;;  %v785_v42 = vsel %vm780_vm4, %v778_v39, 0 }
 0x234   : > { %2083 = vmatpush3.bf16.xpose.msra.mxu1 %v785_v42 }
 0x235   : > { %2094 = vmatprep.subr.bf16.mxu1 %v2239_v9 }
 0x236   : > { %v771_v45 = vpop.f32.mrb[4].mxu0 }
 0x237   : > { %v772_v46 = vadd.f32 %v1923_v43, %v771_v45  ;;  %888 = vrot.lane.b32.xlu1 %v777_v44, %s2242_s29  ;;  %v2080_v47 = vpop.f32.mrb[5].mxu0 }
 0x238   : > { %v774_v48 = vpop.f32.mrb[6].mxu0 }
 0x239   : > { %v2419_v49 = vpack.c.bf16 %v772_v46, %v772_v46  ;;  %v2081_v50 = vpop.f32.mrb[7].mxu0 }
 0x23b   : > { %1001 = vrot.lane.b32.xlu1 %v777_v44, %s2241_s28  ;;  %2085 = vmatmul.mubr.msk.bf16.vlgmr.msra.gmra.mrb[4].mxu1 %vm780_vm4, %v777_v44  ;;  %v845_v51 = vsel %vm843_vm5, %v2419_v49, 0 }
 0x23c   : > { %2089 = vmatpush3.bf16.msra.mxu0 %v845_v51  ;;  %2096 = vmatprep.mubr.msk.bf16.mxu1 %vm2240_vm1, %v2239_v9 }
 0x23d   : > { %2100 = vmatprep.subr.bf16.mxu0 %v2239_v9 }
 0x23f   : > { %1114 = vrot.lane.b32.xlu1 %v778_v39, %s2243_s18 }
 0x243   : > { %1112 = vrot.lane.b32.xlu1 %v777_v44, %s2243_s18 }
 0x2a5   : > { %v892_v52 = vpop.permute.xlu1 %891  ;;  %v1004_v55 = vpop.permute.xlu0 %1003 }
 0x2a6   : > { %v897_v53 = vsel %vm780_vm4, %v892_v52, 0  ;;  %v1009_v57 = vsel %vm780_vm4, %v1004_v55, 0 }
 0x2a7   : > { %2095 = vmatpush3.bf16.xpose.msra.mxu1 %v897_v53 }
 0x2a8   : > { %2106 = vmatprep.subr.bf16.mxu1 %v2239_v9 }
 0x2a9   : > { %v889_v54 = vpop.permute.xlu1 %888 }
 0x2ad   : > { %v1002_v56 = vpop.permute.xlu1 %1001 }
 0x2ae   : > { %2097 = vmatmul.mubr.msk.bf16.vlgmr.msra.gmra.mrb[8].mxu1 %vm780_vm4, %v889_v54 }
 0x2af   : > { %2107 = vmatpush3.bf16.xpose.msra.mxu1 %v1009_v57  ;;  %2108 = vmatprep.mubr.msk.bf16.mxu1 %vm2240_vm1, %v2239_v9 }
 0x2b0   : > { %2118 = vmatprep.subr.bf16.mxu1 %v2239_v9 }
 0x2b1   : > { %v1115_v58 = vpop.permute.xlu1 %1114 }
 0x2b2   : > { %v1120_v59 = vsel %vm780_vm4, %v1115_v58, 0 }
 0x2b5   : > { %v1113_v60 = vpop.permute.xlu1 %1112 }
 0x2b6   : > { %2109 = vmatmul.mubr.msk.bf16.vlgmr.msra.gmra.mrb[12].mxu1 %vm780_vm4, %v1002_v56 }
 0x2b7   : > { %2119 = vmatpush3.bf16.xpose.msra.mxu1 %v1120_v59  ;;  %2120 = vmatprep.mubr.msk.bf16.mxu1 %vm2240_vm1, %v2239_v9 }
 0x2b8   : > { %2130 = vmatprep.subr.bf16.mxu1 %v2239_v9 }
 0x2be   : > { %2121 = vmatmul.mubr.msk.bf16.vlgmr.msra.gmra.mrb[16].mxu1 %vm780_vm4, %v1113_v60 }
 0x2bf   : > { %2134 = vmatprep.mubr.msk.bf16.mxu1 %vm2240_vm1, %v2239_v9 }
 0x30e   : > { %v821_v61 = vpop.f32.mrb[4].mxu1 }
 0x30f   : > { %v827_v62 = vmul.f32 0.35355338, %v821_v61  ;;  %v2086_v63 = vpop.f32.mrb[5].mxu1 }
 0x310   : > { %v824_v1 = vpop.f32.mrb[6].mxu1 }
 0x311   : > { %v2087_v2 = vpop.f32.mrb[7].mxu1  ;;  %v828_v3 = vsel %vm780_vm4, %v827_v62, -inf }
 0x312   : > { %829 = vmax.xlane.f32.xlu1 %v828_v3 }
 0x381   : > { %v933_v4 = vpop.f32.mrb[8].mxu1 }
 0x382   : > { %v939_v5 = vmul.f32 0.35355338, %v933_v4  ;;  %v2098_v6 = vpop.f32.mrb[9].mxu1 }
 0x383   : > { %v936_v7 = vpop.f32.mrb[10].mxu1  ;;  %v2161_v6 = vld [vmem:[%s2646_s9] sm:$0xff]  }
 0x384   : > { %v2099_v8 = vpop.f32.mrb[11].mxu1  ;;  %v940_v10 = vsel %vm780_vm4, %v939_v5, -inf  ;;  %2131 = vmatpush3.bf16.msra.mxu1 %v2161_v6  ;;  %v2181_v6 = vld [vmem:[%s2652_s15 + $0x8] sm:$0xff]  }
 0x385   : > { %941 = vmax.xlane.f32.xlu0 %v940_v10  ;;  %2132 = vmatprep.subr.bf16.mxu1 %v2239_v9 }
 0x389   : > { %v1045_v11 = vpop.f32.mrb[12].mxu1 }
 0x38a   : > { %v1051_v12 = vmul.f32 0.35355338, %v1045_v11  ;;  %v2110_v13 = vpop.f32.mrb[13].mxu1 }
 0x38b   : > { %v1048_v14 = vpop.f32.mrb[14].mxu1 }
 0x38c   : > { %v2111_v15 = vpop.f32.mrb[15].mxu1  ;;  %v1052_v16 = vsel %vm780_vm4, %v1051_v12, -inf }
 0x38d   : > { %1053 = vmax.xlane.f32.xlu1 %v1052_v16  ;;  %v2162_v16 = vld [vmem:[%s2646_s9 + $0x8] sm:$0xff]  }
 0x38e   : > { %2133 = vmatpush3.bf16.msra.mxu1 %v2162_v16  ;;  %v2190_v16 = vld [vmem:[%s2652_s15 + $0x98] sm:$0xff]  }
 0x391   : > { %v1156_v17 = vpop.f32.mrb[16].mxu1 }
 0x392   : > { %v1162_v18 = vmul.f32 0.35355338, %v1156_v17  ;;  %v2122_v19 = vpop.f32.mrb[17].mxu1 }
 0x393   : > { %v1159_v20 = vpop.f32.mrb[18].mxu1 }
 0x394   : > { %v2123_v21 = vpop.f32.mrb[19].mxu1  ;;  %v1163_v22 = vsel %vm780_vm4, %v1162_v18, -inf }
 0x395   : > { %1164 = vmax.xlane.f32.xlu1 %v1163_v22 }
 0x39f   : > { %v830_v23 = vpop.xlane.xlu1 %829 }
 0x3a0   : > { %v831_v24 = vsub.f32 %v827_v62, %v830_v23 }
 0x3a2   : > { %v832_v25 = vmul.f32 1.442695, %v831_v24 }
 0x3a4   : > { %2211 = vpow2.f32 %v832_v25 }
 0x3ae   : > { %v2212_v26 = vpop.eup %2211 }
 0x3af   : > { %v834_v27 = vsel %vm780_vm4, %v2212_v26, 0.0 }
 0x3b0   : > { %835 = vadd.xlane.f32.xlu0 %v834_v27  ;;  %v1935_v27 = vld [vmem:[%s2647_s10] ss:$0 sm:$0xff] }
 0x412   : > { %v942_v28 = vpop.xlane.xlu0 %941 }
 0x413   : > { %v943_v29 = vsub.f32 %v939_v5, %v942_v28 }
 0x415   : > { %v944_v30 = vmul.f32 1.442695, %v943_v29 }
 0x417   : > { %2213 = vpow2.f32 %v944_v30 }
 0x41a   : > { %v1054_v31 = vpop.xlane.xlu1 %1053 }
 0x41b   : > { %v1055_v32 = vsub.f32 %v1051_v12, %v1054_v31 }
 0x41d   : > { %v1056_v33 = vmul.f32 1.442695, %v1055_v32 }
 0x41f   : > { %2215 = vpow2.f32 %v1056_v33 }
 0x421   : > { %v2214_v34 = vpop.eup %2213 }
 0x422   : > { %v946_v35 = vsel %vm780_vm4, %v2214_v34, 0.0  ;;  %v1165_v39 = vpop.xlane.xlu1 %1164 }
 0x423   : > { %947 = vadd.xlane.f32.xlu1 %v946_v35  ;;  %v1166_v40 = vsub.f32 %v1162_v18, %v1165_v39 }
 0x425   : > { %v1167_v41 = vmul.f32 1.442695, %v1166_v40  ;;  %v2163_v40 = vld [vmem:[%s2650_s13] ss:$16 sps:$4 sm:$0xff]  }
 0x429   : > { %v2216_v36 = vpop.eup %2215 }
 0x42a   : > { %v1058_v37 = vsel %vm780_vm4, %v2216_v36, 0.0 }
 0x42b   : > { %1059 = vadd.xlane.f32.xlu0 %v1058_v37 }
 0x434   : > { %1064 = vrot.lane.b32.xlu1 %v2419_v49, %s2241_s28 }
 0x43d   : > { %v836_v38 = vpop.xlane.xlu0 %835 }
 0x43e   : > { %2217 = vrcp.f32 %v836_v38 }
 0x43f   : > { %2219 = vpow2.f32 %v1167_v41  ;;  %v2166_v41 = vld [vmem:[%s2650_s13 + $0x8] ss:$16 sps:$4 sm:$0xff]  }
 0x441   : > { %953 = vrot.lane.b32.xlu0 %v2419_v49, %s2242_s29 }
 0x448   : > { %v2218_v42 = vpop.eup %2217 }
 0x449   : > { %v838_v43 = vmul.f32 %v2218_v42, %v2212_v26  ;;  %v2220_v45 = vpop.eup %2219  ;;  %v2168_v42 = vld [vmem:[%s2650_s13 + $0xc] ss:$16 sps:$4 sm:$0xff]  }
 0x44a   : > { %v1169_v46 = vsel %vm780_vm4, %v2220_v45, 0.0  ;;  %1459 = vmatprep.subr.bf16.mxu1 %v2168_v42 }
 0x44b   : > { %v839_v44 = vpack.c.bf16 %v838_v43, %v838_v43  ;;  %v2171_v43 = vld [vmem:[%s2650_s13 + $0x24] ss:$16 sps:$4 sm:$0xff]  }
 0x44d   : > { %2091 = vmatmul.mubr.msk.bf16.vlgmr.msra.gmra.mrb[8].mxu0 %vm780_vm4, %v839_v44  ;;  %v2174_v44 = vld [vmem:[%s2650_s13 + $0x2c] ss:$16 sps:$4 sm:$0xff]  }
 0x44e   : > { %2102 = vmatprep.mubr.msk.bf16.mxu0 %vm2240_vm1, %v2239_v9 }
 0x458   : > { %1170 = vadd.xlane.f32.xlu1 %v1169_v46  ;;  %v2172_v46 = vld [vmem:[%s2650_s13 + $0x28] ss:$16 sps:$4 sm:$0xff]  }
 0x469   : > { %1175 = vrot.lane.b32.xlu1 %v2419_v49, %s2243_s18 }
 0x4b0   : > { %v948_v47 = vpop.xlane.xlu1 %947 }
 0x4b1   : > { %2221 = vrcp.f32 %v948_v47  ;;  %v2247_v47 = vmov 0  }
 0x4b4   : > { %v1065_v54 = vpop.permute.xlu1 %1064 }
 0x4b5   : > { %v1070_v56 = vsel %vm843_vm5, %v1065_v54, 0 }
 0x4b8   : > { %v1060_v48 = vpop.xlane.xlu0 %1059 }
 0x4b9   : > { %2223 = vrcp.f32 %v1060_v48  ;;  %v2175_v48 = vld [vmem:[%s2652_s15 + $0x40] sm:$0xff]  }
 0x4bb   : > { %v2222_v50 = vpop.eup %2221 }
 0x4bc   : > { %v950_v51 = vmul.f32 %v2222_v50, %v2214_v34  ;;  %v954_v52 = vpop.permute.xlu0 %953  ;;  %v2176_v50 = vld [vmem:[%s2652_s15 + $0xc0] sm:$0xff]  }
 0x4bd   : > { %v959_v53 = vsel %vm843_vm5, %v954_v52, 0 }
 0x4be   : > { %2101 = vmatpush3.bf16.msra.mxu0 %v959_v53  ;;  %v951_v55 = vpack.c.bf16 %v950_v51, %v950_v51 }
 0x4bf   : > { %2112 = vmatprep.subr.bf16.mxu0 %v2239_v9 }
 0x4c1   : > { %2103 = vmatmul.mubr.msk.bf16.vlgmr.msra.gmra.mrb[12].mxu0 %vm780_vm4, %v951_v55 }
 0x4c2   : > { %2113 = vmatpush3.bf16.msra.mxu0 %v1070_v56  ;;  %2114 = vmatprep.mubr.msk.bf16.mxu0 %vm2240_vm1, %v2239_v9 }
 0x4c3   : > { %v2224_v49 = vpop.eup %2223  ;;  %2124 = vmatprep.subr.bf16.mxu0 %v2239_v9 }
 0x4c4   : > { %v1062_v57 = vmul.f32 %v2224_v49, %v2216_v36 }
 0x4c6   : > { %v1063_v58 = vpack.c.bf16 %v1062_v57, %v1062_v57 }
 0x4c9   : > { %2115 = vmatmul.mubr.msk.bf16.vlgmr.msra.gmra.mrb[16].mxu0 %vm780_vm4, %v1063_v58  ;;  %v1939_v58 = vld [vmem:[%s2648_s11] ss:$0 sm:$0xff] }
 0x4ca   : > { %2126 = vmatprep.mubr.msk.bf16.mxu0 %vm2240_vm1, %v2239_v9 }
 0x4e5   : > { %v1171_v59 = vpop.xlane.xlu1 %1170 }
 0x4e6   : > { %2225 = vrcp.f32 %v1171_v59 }
 0x4e9   : > { %v1176_v60 = vpop.permute.xlu1 %1175 }
 0x4ea   : > { %v1181_v61 = vsel %vm843_vm5, %v1176_v60, 0 }
 0x4eb   : > { %2125 = vmatpush3.bf16.msra.mxu0 %v1181_v61  ;;  %v1940_v61 = vld [vmem:[%s2649_s12] ss:$0 sm:$0xff] }
 0x4f0   : > { %v2226_v62 = vpop.eup %2225 }
 0x4f1   : > { %v1173_v63 = vmul.f32 %v2226_v62, %v2220_v45  ;;  %v2169_v45 = vld [vmem:[%s2650_s13 + $0x20] ss:$16 sps:$4 sm:$0xff]  }
 0x4f3   : > { %v1174_v1 = vpack.c.bf16 %v1173_v63, %v1173_v63 }
 0x4f5   : > { %2127 = vmatmul.mubr.msk.bf16.vlgmr.msra.gmra.mrb[20].mxu0 %vm780_vm4, %v1174_v1  ;;  %v2177_v1 = vld [vmem:[%s2652_s15] sm:$0xff]  }
 0x4f6   : > { %1450 = vmatprep.mubr.bf16.mxu0 %v2247_v47 }
 0x520   : > { %v881_v2 = vpop.f32.mrb[8].mxu0 }
 0x521   : > { %v2092_v3 = vpop.f32.mrb[9].mxu0 }
 0x522   : > { %v884_v4 = vpop.f32.mrb[10].mxu0 }
 0x523   : > { %v2093_v5 = vpop.f32.mrb[11].mxu0  ;;  %v2179_v4 = vld [vmem:[%s2652_s15 + $0x48] sm:$0xff]  }
 0x524   : > { %v2180_v5 = vld [vmem:[%s2652_s15 + $0xc8] sm:$0xff]  }
 0x594   : > { %v995_v7 = vpop.f32.mrb[12].mxu0 }
 0x595   : > { %1224 = vrot.lane.b32.xlu0 %v995_v7, %s2244_s20  ;;  %v2104_v8 = vpop.f32.mrb[13].mxu0  ;;  %v2182_v7 = vld [vmem:[%s2652_s15 + $0x88] sm:$0xff]  }
 0x596   : > { %v998_v10 = vpop.f32.mrb[14].mxu0  ;;  %v2183_v8 = vld [vmem:[%s2652_s15 + $0x50] sm:$0xff]  }
 0x597   : > { %v2105_v11 = vpop.f32.mrb[15].mxu0  ;;  %v2184_v10 = vld [vmem:[%s2652_s15 + $0xd0] sm:$0xff]  }
 0x598   : > { %v2185_v11 = vld [vmem:[%s2652_s15 + $0x10] sm:$0xff]  }
 0x59c   : > { %v1106_v12 = vpop.f32.mrb[16].mxu0 }
 0x59d   : > { %1228 = vrot.lane.b32.xlu1 %v1106_v12, %s2245_s21  ;;  %v2116_v13 = vpop.f32.mrb[17].mxu0  ;;  %v2186_v12 = vld [vmem:[%s2652_s15 + $0x90] sm:$0xff]   ;;  %s543_s21 = scalar_lea.vmem %s2654_s17, %s1911_s26 }
 0x59e   : > { %v1109_v14 = vpop.f32.mrb[18].mxu0  ;;  %v2187_v13 = vld [vmem:[%s2652_s15 + $0x58] sm:$0xff]  }
 0x59f   : > { %v2117_v15 = vpop.f32.mrb[19].mxu0  ;;  %v2188_v14 = vld [vmem:[%s2652_s15 + $0xd8] sm:$0xff]  }
 0x5a0   : > { %v2189_v15 = vld [vmem:[%s2652_s15 + $0x18] sm:$0xff]  }
 0x5c8   : > { %v1217_v17 = vpop.f32.mrb[20].mxu0 }
 0x5c9   : > { %1232 = vrot.lane.b32.xlu0 %v1217_v17, %s2246_s27  ;;  %v2128_v9 = vpop.f32.mrb[21].mxu0  ;;  %v2191_v17 = vld [vmem:[%s2652_s15 + $0x60] sm:$0xff]  }
 0x5ca   : > { %v1220_v18 = vpop.f32.mrb[22].mxu0  ;;  %v2192_v9 = vld [vmem:[%s2652_s15 + $0xe0] sm:$0xff]  }
 0x5cb   : > { %v2129_v19 = vpop.f32.mrb[23].mxu0  ;;  %v2193_v18 = vld [vmem:[%s2652_s15 + $0x20] sm:$0xff]  }
 0x5cc   : > { %v2194_v19 = vld [vmem:[%s2652_s15 + $0xa0] sm:$0xff]  }
 0x607   : > { %v1225_v20 = vpop.permute.xlu0 %1224 }
 0x608   : > { %v1235_v22 = vsel %vm780_vm4, %v881_v2, %v1225_v20  ;;  %v2178_v2 = vld [vmem:[%s2652_s15 + $0x80] sm:$0xff]   ;;  %v2195_v20 = vld [vmem:[%s2652_s15 + $0x68] sm:$0xff]  }
 0x60f   : > { %v1229_v21 = vpop.permute.xlu1 %1228 }
 0x610   : > { %v1237_v23 = vsel %vm1236_vm6, %v1235_v22, %v1229_v21  ;;  %v2196_v21 = vld [vmem:[%s2652_s15 + $0xe8] sm:$0xff]  }
 0x611   : > { %v2197_v22 = vld [vmem:[%s2652_s15 + $0x28] sm:$0xff]  }
 0x63b   : > { %v1233_v24 = vpop.permute.xlu0 %1232 }
 0x63c   : > { %v1239_v25 = vsel %vm1238_vm7, %v1237_v23, %v1233_v24  ;;  %v2198_v23 = vld [vmem:[%s2652_s15 + $0xa8] sm:$0xff]   ;;  %v2199_v24 = vld [vmem:[%s2652_s15 + $0x70] sm:$0xff]  }
 0x63d   : > { %v1240_v26 = vpack.c.bf16 %v1239_v25, %v1239_v25  ;;  %v2200_v25 = vld [vmem:[%s2652_s15 + $0xf0] sm:$0xff]  }
 0x63f   : > { %2135 = vmatmul.mubr.msk.bf16.vlgmr.msra.gmra.mrb[20].mxu1 %vm546_vm0, %v1240_v26  ;;  %v2201_v26 = vld [vmem:[%s2652_s15 + $0x30] sm:$0xff]  }
 0x640   : > { %1460 = vmatpush1.bf16.msra.mxu1 %v2166_v41  ;;  %1491 = vmatprep.mubr.bf16.mxu1 %v2247_v47 }
 0x641   : > { %1461 = vmatprep.subr.bf16.mxu1 %v2174_v44 }
 0x644   : > { %1462 = vmatpush1.bf16.msra.mxu1 %v2172_v46 }
 0x645   : > { %2036 = vmatprep.subr.bf16.mxu1 %v2176_v50 }
 0x712   : > { %v1301_v28 = vpop.f32.mrb[20].mxu1 }
 0x713   : > { %v1302_v29 = vadd.f32 %v1935_v27, %v1301_v28  ;;  %v2136_v30 = vpop.f32.mrb[21].mxu1  ;;  %v2202_v27 = vld [vmem:[%s2652_s15 + $0xb0] sm:$0xff]   ;;  %v2203_v28 = vld [vmem:[%s2652_s15 + $0x78] sm:$0xff]  }
 0x714   : > { %v1304_v31 = vpop.f32.mrb[22].mxu1  ;;  %v2205_v30 = vld [vmem:[%s2652_s15 + $0x38] sm:$0xff]  }
 0x715   : > { %v2487_v32 = vadd.f32 %v1302_v29, %v2354_v0  ;;  %v2137_v33 = vpop.f32.mrb[23].mxu1  ;;  %v2165_v0 = vld [vmem:[%s2650_s13 + $0x4] ss:$16 sps:$4 sm:$0xff]   ;;  %v2204_v29 = vld [vmem:[%s2652_s15 + $0xf8] sm:$0xff]  }
 0x716   : > { %1418 = vmatprep.subr.bf16.mxu0 %v2165_v0  ;;  %v2206_v31 = vld [vmem:[%s2652_s15 + $0xb8] sm:$0xff]   ;;  %v1355_v33 = vlaneseq }
 0x717   : > { %v1308_v34 = vsel %vm546_vm0, %v2487_v32, 0.0  ;;  %1419 = vmatpush1.bf16.msra.mxu0 %v2163_v40 }
 0x718   : > { %1309 = vadd.xlane.f32.xlu1 %v1308_v34  ;;  %1420 = vmatprep.subr.bf16.mxu0 %v2171_v43  ;;  %v1356_v34 = vshrl.u32 %v1355_v33, 7 }
 0x71b   : > { %1421 = vmatpush1.bf16.msra.mxu0 %v2169_v45 }
 0x71c   : > { %2014 = vmatprep.subr.bf16.mxu0 %v2175_v48 }
 0x7a5   : > { %v1310_v35 = vpop.xlane.xlu1 %1309 }
 0x7a6   : > { %v1311_v36 = vmul.f32 0.03125, %v1310_v35  ;;  %v1357_v35 = vsub.s32 0, %v1356_v34 }
 0x7a8   : > { %v1312_v37 = vsub.f32 %v2487_v32, %v1311_v36  ;;  %v1365_v36 = vsub.s32 2, %v1356_v34 }
 0x7aa   : > { %v1313_v38 = vmul.f32 %v1312_v37, %v1312_v37  ;;  %v1325_v59 = vmul.f32 %v1939_v58, %v1312_v37  ;;  %v1353_v37 = vld [vmem:[%s2651_s14] sm:$0xf] }
 0x7ab   : > { %v1358_v40 = vrot.slane %v1353_v37, %v1357_v35  ;;  %v1366_v0 = vrot.slane %v1353_v37, %v1365_v36 }
 0x7ac   : > { %v1314_v39 = vsel %vm546_vm0, %v1313_v38, 0.0  ;;  %v1361_v38 = vsub.s32 1, %v1356_v34 }
 0x7ad   : > { %1315 = vadd.xlane.f32.xlu0 %v1314_v39  ;;  %v1369_v39 = vsub.s32 3, %v1356_v34 }
 0x7ae   : > { %v1362_v41 = vrot.slane %v1353_v37, %v1361_v38 }
 0x7af   : > { %v1370_v42 = vrot.slane %v1353_v37, %v1369_v39 }
 0x83a   : > { %v1316_v51 = vpop.xlane.xlu0 %1315 }
 0x83b   : > { %v1317_v52 = vmul.f32 0.032258064, %v1316_v51 }
 0x83d   : > { %2227 = vrsqrt.f32 %v1317_v52  ;;  %vm1328_vm8 = vcmp.eq.f32.partialorder %v1317_v52, inf  ;;  %v1331_v55 = vand.u32 2147483648, %v1317_v52  ;;  %vm1330_vm9 = vcmp.eq.f32.partialorder %v1317_v52, 0.0 }
 0x847   : > { %v2228_v53 = vpop.eup %2227 }
 0x848   : > { %v1327_v54 = vmul.f32 %v2228_v53, %v1317_v52 }
 0x84a   : > { %v1329_v56 = vsel %vm1328_vm8, %v1317_v52, %v1327_v54 }
 0x84b   : > { %v1332_v49 = vsel %vm1330_vm9, %v1331_v55, %v1329_v56 }
 0x84c   : > { %v1333_v57 = vadd.f32 1e-06, %v1332_v49 }
 0x84e   : > { %2229 = vrcp.f32 %v1333_v57 }
 0x858   : > { %v2230_v60 = vpop.eup %2229 }
 0x859   : > { %v1335_v62 = vmul.f32 %v2230_v60, %v1325_v59 }
 0x85b   : > { %v1343_v63 = vadd.f32 %v1940_v61, %v1335_v62 }
 0x85d   : > { %v1344_v3 = vpack.c.bf16 %v1343_v63, %v1343_v63 }
 0x85f   : > { %1949 = vmatmul.mubr.msk.bf16.vlgmr.msra.gmra.mrb[24].mxu0 %vm546_vm0, %v1344_v3  ;;  %1950 = vmatmul.mubr.msk.bf16.vlgmr.msra.gmra.mrb[24].mxu1 %vm546_vm0, %v1344_v3 }
 0x860   : > { %2015 = vmatpush3.bf16.msra.mxu0 %v2177_v1  ;;  %2037 = vmatpush3.bf16.msra.mxu1 %v2178_v2  ;;  %v1951_v2 = vld [vmem:[%s2653_s16] ss:$0 sm:$0xff] }
 0x861   : > { %2016 = vmatprep.subr.bf16.mxu0 %v2179_v4  ;;  %2038 = vmatprep.subr.bf16.mxu1 %v2180_v5 }
 0x864   : > { %2017 = vmatpush3.bf16.msra.mxu0 %v2181_v6  ;;  %2039 = vmatpush3.bf16.msra.mxu1 %v2182_v7 }
 0x865   : > { %2018 = vmatprep.subr.bf16.mxu0 %v2183_v8  ;;  %2040 = vmatprep.subr.bf16.mxu1 %v2184_v10 }
 0x868   : > { %2019 = vmatpush3.bf16.msra.mxu0 %v2185_v11  ;;  %2041 = vmatpush3.bf16.msra.mxu1 %v2186_v12 }
 0x869   : > { %2020 = vmatprep.subr.bf16.mxu0 %v2187_v13  ;;  %2042 = vmatprep.subr.bf16.mxu1 %v2188_v14 }
 0x86c   : > { %2021 = vmatpush3.bf16.msra.mxu0 %v2189_v15  ;;  %2043 = vmatpush3.bf16.msra.mxu1 %v2190_v16 }
 0x86d   : > { %2022 = vmatprep.subr.bf16.mxu0 %v2191_v17  ;;  %2044 = vmatprep.subr.bf16.mxu1 %v2192_v9 }
 0x870   : > { %2023 = vmatpush3.bf16.msra.mxu0 %v2193_v18  ;;  %2045 = vmatpush3.bf16.msra.mxu1 %v2194_v19 }
 0x871   : > { %2024 = vmatprep.subr.bf16.mxu0 %v2195_v20  ;;  %2046 = vmatprep.subr.bf16.mxu1 %v2196_v21 }
 0x874   : > { %2025 = vmatpush3.bf16.msra.mxu0 %v2197_v22  ;;  %2047 = vmatpush3.bf16.msra.mxu1 %v2198_v23 }
 0x875   : > { %2026 = vmatprep.subr.bf16.mxu0 %v2199_v24  ;;  %2048 = vmatprep.subr.bf16.mxu1 %v2200_v25 }
 0x878   : > { %2027 = vmatpush3.bf16.msra.mxu0 %v2201_v26  ;;  %2049 = vmatpush3.bf16.msra.mxu1 %v2202_v27 }
 0x879   : > { %2028 = vmatprep.subr.bf16.mxu0 %v2203_v28  ;;  %2050 = vmatprep.subr.bf16.mxu1 %v2204_v29 }
 0x87c   : > { %2029 = vmatpush3.bf16.msra.mxu0 %v2205_v30  ;;  %2051 = vmatpush3.bf16.msra.mxu1 %v2206_v31 }
 0x932   : > { %v1452_v43 = vpop.f32.mrb[24].mxu0  ;;  %v1493_v44 = vpop.f32.mrb[24].mxu1 }
 0x933   : > { %v1453_v45 = vadd.f32 %v1452_v43, %v1358_v40  ;;  %v1494_v46 = vadd.f32 %v1493_v44, %v1366_v0  ;;  %v1454_v47 = vpop.f32.mrb[25].mxu0  ;;  %v1495_v48 = vpop.f32.mrb[25].mxu1 }
 0x934   : > { %v1455_v50 = vadd.f32 %v1454_v47, %v1362_v41  ;;  %v1496_v51 = vadd.f32 %v1495_v48, %v1370_v42  ;;  %v1456_v52 = vpop.f32.mrb[26].mxu0  ;;  %v1497_v53 = vpop.f32.mrb[26].mxu1 }
 0x935   : > { %v1500_v54 = vmax.f32 %v1453_v45, 0.0  ;;  %v1502_v55 = vmax.f32 %v1494_v46, 0.0  ;;  %v1457_v56 = vpop.f32.mrb[27].mxu0  ;;  %v1498_v49 = vpop.f32.mrb[27].mxu1 }
 0x936   : > { %v1501_v57 = vmax.f32 %v1455_v50, 0.0  ;;  %v1503_v58 = vmax.f32 %v1496_v51, 0.0 }
 0x937   : > { %v1504_v61 = vpack.c.bf16 %v1500_v54, %v1500_v54  ;;  %v1506_v62 = vpack.c.bf16 %v1502_v55, %v1502_v55 }
 0x938   : > { %v1505_v59 = vpack.c.bf16 %v1501_v57, %v1501_v57  ;;  %v1507_v60 = vpack.c.bf16 %v1503_v58, %v1503_v58 }
 0x93a   : > { %1803 = vmatprep.mubr.bf16.mxu0 %v1505_v59  ;;  %1843 = vmatprep.mubr.bf16.mxu1 %v1507_v60 }
 0x93b   : > { %1804 = vmatmul.mubr.bf16.vlgmr.msra.gmra.mrb[28].mxu0 %v1504_v61  ;;  %1844 = vmatmul.mubr.bf16.vlgmr.msra.gmra.mrb[28].mxu1 %v1506_v62 }
 0xa0e   : > { %v2030_v63 = vpop.f32.mrb[28].mxu0  ;;  %v2052_v1 = vpop.f32.mrb[28].mxu1 }
 0xa0f   : > { %v2031_v3 = vpop.f32.mrb[29].mxu0  ;;  %v2053_v4 = vpop.f32.mrb[29].mxu1 }
 0xa10   : > { %v2032_v5 = vadd.f32 %v2031_v3, %v2030_v63  ;;  %v2054_v6 = vadd.f32 %v2053_v4, %v2052_v1  ;;  %v2033_v7 = vpop.f32.mrb[30].mxu0  ;;  %v2055_v8 = vpop.f32.mrb[30].mxu1 }
 0xa11   : > { %v2034_v10 = vpop.f32.mrb[31].mxu0  ;;  %v2056_v11 = vpop.f32.mrb[31].mxu1 }
 0xa12   : > { %v1806_v12 = vadd.f32 %v2032_v5, %v1951_v2 }
 0xa14   : > { %v1846_v13 = vadd.f32 %v2054_v6, %v1806_v12 }
 0xa16   : > { %v1851_v14 = vadd.f32 %v1846_v13, %v2487_v32 }
 0xa18   : > { %1852 = vst.msk [vmem:[%s543_s21] sm:$0xff] %vm546_vm0, %v1851_v14 }
 0xa19 PF: > { %s27_s24 = sadd.s32 1, %s2237_s24  }
 0xa1a   : > { %p24_p4 = scmp.ge.s32.totalorder %s27_s24, 4  }
 0xa1c   :  { %26 = sbr.rel (!%p24_p4) target bundleno = 3 (0x3), region = 118 }

// kernel: connection_forward.12
= control target key start
LH: loop header
LB: loop body
LE: loop exit
PB: predicated region body
PF: predicated region fallthrough
CT: control target
= control target key end

     0   :  { %s2771_s0 = inlined_call_operand.vmem [shape: f32[2,8,32], index: 0, kind: input, shape index: {}]   ;;  %s2772_s1 = inlined_call_operand.vmem [shape: f32[2,8,32], index: 1, kind: input, shape index: {}]   ;;  %s2773_s2 = inlined_call_operand.vmem [shape: f32[1,32], index: 2, kind: input, shape index: {}]   ;;  %s2774_s3 = inlined_call_operand.vmem [shape: f32[1,32], index: 3, kind: input, shape index: {}]   ;;  %s2775_s4 = inlined_call_operand.vmem [shape: bf16[32,32], index: 4, kind: input, shape index: {}]   ;;  %s2776_s5 = inlined_call_operand.vmem [shape: f32[1,32], index: 5, kind: input, shape index: {}]   ;;  %s2777_s6 = inlined_call_operand.vmem [shape: bf16[32,32], index: 6, kind: input, shape index: {}]   ;;  %s2778_s7 = inlined_call_operand.vmem [shape: f32[1,32], index: 7, kind: input, shape index: {}]   ;;  %s2779_s8 = inlined_call_operand.vmem [shape: bf16[32,32], index: 8, kind: input, shape index: {}]   ;;  %s2780_s9 = inlined_call_operand.vmem [shape: f32[1,32], index: 9, kind: input, shape index: {}]   ;;  %s2781_s10 = inlined_call_operand.vmem [shape: bf16[32,32], index: 10, kind: input, shape index: {}]   ;;  %s2782_s11 = inlined_call_operand.vmem [shape: f32[1,32], index: 11, kind: input, shape index: {}]   ;;  %s2783_s12 = inlined_call_operand.vmem [shape: f32[1,32], index: 12, kind: input, shape index: {}]   ;;  %s2784_s13 = inlined_call_operand.vmem [shape: f32[1,32], index: 13, kind: input, shape index: {}]   ;;  %s2785_s14 = inlined_call_operand.vmem [shape: bf16[32,512], index: 14, kind: input, shape index: {}]   ;;  %s2786_s15 = inlined_call_operand.vmem [shape: f32[1,512], index: 15, kind: input, shape index: {}]   ;;  %s2787_s16 = inlined_call_operand.vmem [shape: bf16[512,32], index: 16, kind: input, shape index: {}]   ;;  %s2788_s17 = inlined_call_operand.vmem [shape: f32[1,32], index: 17, kind: input, shape index: {}]   ;;  %s2789_s18 = inlined_call_operand.vmem [shape: f32[2,8,32], index: 18, kind: input, shape index: {}]   ;;  %s2790_s19 = inlined_call_operand.vmem [shape: f32[2,8,32], index: 19, kind: output, shape index: {}]  }
   0x1   :  { %2791 = sst [smem:[#allocation2_spill]] %s2771_s0  ;;  %s2469_s0 = smov 0  }
   0x2   :  { %2792 = sst [smem:[#allocation3_spill]] %s2772_s1 }
   0x3   :  { %2793 = sst [smem:[#allocation4_spill]] %s2773_s2 }
   0x4   :  { %2794 = sst [smem:[#allocation5_spill]] %s2774_s3 }
   0x5 LB: > { %s2025_s30 = sadd.s32 4294967295, %s2358_s0   ;;  %p2029_p0 = scmp.ge.s32.totalorder %s2358_s0, 1  ;;  %s2358_s0 = sphi %s2469_s0, %s29_s0  }
   0x6   : > { %p554_p1 = scmp.lt.s32.totalorder %s2358_s0, 3 }
   0x8   : > { %p555_p2 = pnand %p2029_p0, %p554_p1 }
   0x9   : > { %p616_p3 = scmp.lt.s32.totalorder (!%p555_p2), %s2025_s30, 1  ;;  %vm634_vm0 = vcmask (!%p555_p2), 261120   ;;  %s2795_s22 = sld [smem:[#allocation2_spill]] (!%p555_p2)  ;;  %v2276_v7 = vld [vmem:[%s2777_s6] sm:$0xff] (!%p555_p2)   ;;  %v2360_v8 = vmov (!%p555_p2), 0.0   ;;  %v2277_v10 = vld [vmem:[%s2777_s6 + $0x8] sm:$0xff] (!%p555_p2)  }
   0xa   : > { %558 = sbr.rel (%p555_p2) target bundleno = 2581 (0xa15), region = 96  ;;  %2187 = vmatprep.subr.bf16.mxu1 (!%p555_p2), %v2360_v8  ;;  %s2796_s26 = sld [smem:[#allocation3_spill]] (!%p555_p2)  ;;  %2179 = vmatprep.subr.bf16.mxu0 (!%p555_p2), %v2360_v8  ;;  %v2278_v9 = vld [vmem:[%s2775_s4] sm:$0xff] (!%p555_p2)   ;;  %vm2361_vm1 = vmmov (!%p555_p2), 0   ;;  %v2279_v12 = vld [vmem:[%s2775_s4 + $0x8] sm:$0xff] (!%p555_p2)   ;;  %vm873_vm4 = vcmask (!%p555_p2), 64512  }
   0xb   : > { %2188 = vmatpush3.bf16.msra.mxu1 (!%p555_p2), %v2276_v7  ;;  %2191 = vmatprep.mubr.msk.bf16.mxu1 (!%p555_p2), %vm2361_vm1, %v2360_v8  ;;  %s2797_s24 = sld [smem:[#allocation4_spill]] (!%p555_p2)  ;;  %v2040_v29 = vld [vmem:[%s2778_s7] ss:$0 sm:$0xff] (!%p555_p2)  ;;  %s2362_s29 = smov (!%p555_p2), 120   ;;  %v2281_v47 = vld [vmem:[%s2779_s8 + $0x8] sm:$0xff] (!%p555_p2)   ;;  %vm936_vm5 = vcmask (!%p555_p2), 1043456  }
   0xc   : > { %2189 = vmatprep.subr.bf16.mxu1 (!%p555_p2), %v2360_v8  ;;  %2180 = vmatpush3.bf16.msra.mxu0 (!%p555_p2), %v2278_v9  ;;  %v2036_v37 = vld [vmem:[%s2776_s5] ss:$0 sm:$0xff] (!%p555_p2)  ;;  %s2365_s21 = smov (!%p555_p2), 8   ;;  %s2366_s1 = smov (!%p555_p2), 16   ;;  %vm1329_vm6 = vcmask (!%p555_p2), 130048   ;;  %vm1331_vm7 = vcmask (!%p555_p2), 195584  }
   0xd   : > { %2181 = vmatprep.subr.bf16.mxu0 (!%p555_p2), %v2360_v8  ;;  %2183 = vmatprep.mubr.msk.bf16.mxu0 (!%p555_p2), %vm2361_vm1, %v2360_v8  ;;  %v2280_v46 = vld [vmem:[%s2779_s8] sm:$0xff] (!%p555_p2)  }
   0xf   : > { %2190 = vmatpush3.bf16.msra.mxu1 (!%p555_p2), %v2277_v10 }
  0x10   : > { %2182 = vmatpush3.bf16.msra.mxu0 (!%p555_p2), %v2279_v12  ;;  %2203 = vmatprep.subr.bf16.mxu1 (!%p555_p2), %v2360_v8 }
  0x11   : > { %s2800_s30 = smov (!%p616_p3, %s2025_s30), 1  ;;  %2195 = vmatprep.subr.bf16.mxu0 %v2360_v8  ;;  %v2034_v22 = vld [vmem:[%s2797_s24] ss:$0 sm:$0xff] }
  0x12   : > { %s2477_s20 = sshll.u32 %s2800_s30, 3  ;;  %s2363_s30 = smov 112  }
  0x13   : > { %s619_s2 = scalar_lea.vmem %s2795_s22, %s2477_s20  ;;  %s623_s27 = scalar_lea.vmem %s2796_s26, %s2477_s20 }
  0x14   : > { %v2483_v0 = vld [vmem:[%s619_s2] sm:$0xff]  ;;  %s2798_s26 = sld [smem:[#allocation5_spill]]  ;;  %s2364_s22 = smov 104  }
  0x15   : > { %v635_v1 = vsel %vm634_vm0, %v2483_v0, 0.0  ;;  %v673_v11 = vld [vmem:[%s623_s27] sm:$0xff]  ;;  %s627_s23 = scalar_lea.vmem %s2789_s18, %s2477_s20  ;;  %s631_s3 = scalar_lea.vmem %s2790_s19, %s2477_s20 }
  0x16   : > { %636 = vadd.xlane.f32.xlu0 %v635_v1  ;;  %v2513_v13 = vpack.c.bf16 %v673_v11, %v673_v11 }
  0x18   : > { %2192 = vmatmul.mubr.msk.bf16.vlgmr.msra.gmra.mrb[0].mxu1 %vm634_vm0, %v2513_v13 }
  0x19   : > { %2205 = vmatprep.mubr.msk.bf16.mxu1 %vm2361_vm1, %v2360_v8 }
  0x1a   : > { %v2035_v25 = vld [vmem:[%s2798_s26] ss:$0 sm:$0xff] }
  0xa3   : > { %v637_v2 = vpop.xlane.xlu0 %636 }
  0xa4   : > { %v639_v3 = vmul.f32 0.03125, %v637_v2 }
  0xa6   : > { %v640_v4 = vsub.f32 %v2483_v0, %v639_v3 }
  0xa8   : > { %v641_v5 = vmul.f32 %v640_v4, %v640_v4  ;;  %v653_v23 = vmul.f32 %v2034_v22, %v640_v4 }
  0xaa   : > { %v642_v6 = vsel %vm634_vm0, %v641_v5, 0.0 }
  0xab   : > { %643 = vadd.xlane.f32.xlu0 %v642_v6 }
  0xeb   : > { %v801_v30 = vpop.f32.mrb[0].mxu1 }
  0xec   : > { %v802_v31 = vadd.f32 %v2040_v29, %v801_v30  ;;  %v2193_v32 = vpop.f32.mrb[1].mxu1 }
  0xed   : > { %v804_v33 = vpop.f32.mrb[2].mxu1 }
  0xee   : > { %v871_v34 = vpack.c.bf16 %v802_v31, %v802_v31  ;;  %v2194_v35 = vpop.f32.mrb[3].mxu1 }
  0xf0   : > { %984 = vrot.lane.b32.xlu1 %v871_v34, %s2362_s29  ;;  %1096 = vrot.lane.b32.xlu0 %v871_v34, %s2363_s30  ;;  %v878_v36 = vsel %vm873_vm4, %v871_v34, 0 }
  0xf1   : > { %2204 = vmatpush3.bf16.xpose.msra.mxu1 %v878_v36 }
  0xf2   : > { %2215 = vmatprep.subr.bf16.mxu1 %v2360_v8 }
 0x138   : > { %v644_v14 = vpop.xlane.xlu0 %643 }
 0x139   : > { %v645_v15 = vmul.f32 0.032258064, %v644_v14 }
 0x13b   : > { %2328 = vrsqrt.f32 %v645_v15  ;;  %vm656_vm2 = vcmp.eq.f32.partialorder %v645_v15, inf  ;;  %v659_v18 = vand.u32 2147483648, %v645_v15  ;;  %vm658_vm3 = vcmp.eq.f32.partialorder %v645_v15, 0.0 }
 0x145   : > { %v2329_v16 = vpop.eup %2328 }
 0x146   : > { %v655_v17 = vmul.f32 %v2329_v16, %v645_v15 }
 0x148   : > { %v657_v19 = vsel %vm656_vm2, %v645_v15, %v655_v17 }
 0x149   : > { %v660_v20 = vsel %vm658_vm3, %v659_v18, %v657_v19 }
 0x14a   : > { %v661_v21 = vadd.f32 1e-06, %v660_v20  ;;  %v2044_v20 = vld [vmem:[%s2780_s9] ss:$0 sm:$0xff] }
 0x14c   : > { %2330 = vrcp.f32 %v661_v21 }
 0x156   : > { %v2331_v24 = vpop.eup %2330 }
 0x157   : > { %v663_v26 = vmul.f32 %v2331_v24, %v653_v23 }
 0x159   : > { %v671_v27 = vadd.f32 %v2035_v25, %v663_v26 }
 0x15b   : > { %v672_v28 = vpack.c.bf16 %v671_v27, %v671_v27 }
 0x15d   : > { %2184 = vmatmul.mubr.msk.bf16.vlgmr.msra.gmra.mrb[0].mxu0 %vm634_vm0, %v672_v28 }
 0x15e   : > { %2199 = vmatprep.mubr.msk.bf16.mxu0 %vm2361_vm1, %v2360_v8  ;;  %2196 = vmatpush3.bf16.msra.mxu0 %v2280_v46 }
 0x15f   : > { %2197 = vmatprep.subr.bf16.mxu0 %v2360_v8 }
 0x162   : > { %v985_v39 = vpop.permute.xlu1 %984  ;;  %2198 = vmatpush3.bf16.msra.mxu0 %v2281_v47  ;;  %v1097_v48 = vpop.permute.xlu0 %1096 }
 0x163   : > { %v990_v45 = vsel %vm873_vm4, %v985_v39, 0  ;;  %2209 = vmatprep.subr.bf16.mxu0 %v2360_v8  ;;  %v1102_v50 = vsel %vm873_vm4, %v1097_v48, 0 }
 0x165   : > { %2200 = vmatmul.mubr.msk.bf16.vlgmr.msra.gmra.mrb[4].mxu0 %vm634_vm0, %v2513_v13 }
 0x166   : > { %2211 = vmatprep.mubr.msk.bf16.mxu0 %vm2361_vm1, %v2360_v8 }
 0x230   : > { %v735_v38 = vpop.f32.mrb[0].mxu0 }
 0x231   : > { %v736_v40 = vadd.f32 %v2036_v37, %v735_v38  ;;  %v2185_v41 = vpop.f32.mrb[1].mxu0 }
 0x232   : > { %v738_v42 = vpop.f32.mrb[2].mxu0 }
 0x233   : > { %v870_v43 = vpack.c.bf16 %v736_v40, %v736_v40  ;;  %v2186_v44 = vpop.f32.mrb[3].mxu0 }
 0x235   : > { %981 = vrot.lane.b32.xlu1 %v870_v43, %s2362_s29  ;;  %2206 = vmatmul.mubr.msk.bf16.vlgmr.msra.gmra.mrb[4].mxu1 %vm873_vm4, %v870_v43 }
 0x236   : > { %2216 = vmatpush3.bf16.xpose.msra.mxu1 %v990_v45  ;;  %2217 = vmatprep.mubr.msk.bf16.mxu1 %vm2361_vm1, %v2360_v8 }
 0x237   : > { %2227 = vmatprep.subr.bf16.mxu1 %v2360_v8 }
 0x238   : > { %v864_v21 = vpop.f32.mrb[4].mxu0 }
 0x239   : > { %1094 = vrot.lane.b32.xlu1 %v870_v43, %s2363_s30  ;;  %v2201_v22 = vpop.f32.mrb[5].mxu0  ;;  %v865_v23 = vadd.f32 %v2044_v20, %v864_v21 }
 0x23a   : > { %v867_v24 = vpop.f32.mrb[6].mxu0 }
 0x23b   : > { %v2202_v26 = vpop.f32.mrb[7].mxu0  ;;  %v872_v28 = vpack.c.bf16 %v865_v23, %v865_v23 }
 0x23d   : > { %1207 = vrot.lane.b32.xlu1 %v871_v34, %s2364_s22  ;;  %v938_v29 = vsel %vm936_vm5, %v872_v28, 0 }
 0x23e   : > { %2210 = vmatpush3.bf16.msra.mxu0 %v938_v29  ;;  %v2056_v29 = vld [vmem:[%s2782_s11] ss:$0 sm:$0xff] }
 0x23f   : > { %2221 = vmatprep.subr.bf16.mxu0 %v2360_v8 }
 0x241   : > { %1205 = vrot.lane.b32.xlu1 %v870_v43, %s2364_s22 }
 0x2a7   : > { %v982_v49 = vpop.permute.xlu1 %981 }
 0x2a8   : > { %2218 = vmatmul.mubr.msk.bf16.vlgmr.msra.gmra.mrb[8].mxu1 %vm873_vm4, %v982_v49 }
 0x2a9   : > { %2228 = vmatpush3.bf16.xpose.msra.mxu1 %v1102_v50  ;;  %2229 = vmatprep.mubr.msk.bf16.mxu1 %vm2361_vm1, %v2360_v8 }
 0x2aa   : > { %2239 = vmatprep.subr.bf16.mxu1 %v2360_v8 }
 0x2ab   : > { %v1095_v51 = vpop.permute.xlu1 %1094 }
 0x2af   : > { %v1208_v52 = vpop.permute.xlu1 %1207 }
 0x2b0   : > { %v1213_v53 = vsel %vm873_vm4, %v1208_v52, 0  ;;  %2230 = vmatmul.mubr.msk.bf16.vlgmr.msra.gmra.mrb[12].mxu1 %vm873_vm4, %v1095_v51 }
 0x2b1   : > { %2240 = vmatpush3.bf16.xpose.msra.mxu1 %v1213_v53  ;;  %2241 = vmatprep.mubr.msk.bf16.mxu1 %vm2361_vm1, %v2360_v8 }
 0x2b2   : > { %2251 = vmatprep.subr.bf16.mxu1 %v2360_v8 }
 0x2b3   : > { %v1206_v54 = vpop.permute.xlu1 %1205 }
 0x2b8   : > { %2242 = vmatmul.mubr.msk.bf16.vlgmr.msra.gmra.mrb[16].mxu1 %vm873_vm4, %v1206_v54 }
 0x2b9   : > { %2255 = vmatprep.mubr.msk.bf16.mxu1 %vm2361_vm1, %v2360_v8 }
 0x308   : > { %v914_v55 = vpop.f32.mrb[4].mxu1 }
 0x309   : > { %v920_v56 = vmul.f32 0.35355338, %v914_v55  ;;  %v2207_v57 = vpop.f32.mrb[5].mxu1 }
 0x30a   : > { %v917_v58 = vpop.f32.mrb[6].mxu1 }
 0x30b   : > { %v2208_v59 = vpop.f32.mrb[7].mxu1  ;;  %v921_v60 = vsel %vm873_vm4, %v920_v56, -inf }
 0x30c   : > { %922 = vmax.xlane.f32.xlu1 %v921_v60 }
 0x37b   : > { %v1026_v61 = vpop.f32.mrb[8].mxu1 }
 0x37c   : > { %v1032_v62 = vmul.f32 0.35355338, %v1026_v61  ;;  %v2219_v63 = vpop.f32.mrb[9].mxu1 }
 0x37d   : > { %v1029_v1 = vpop.f32.mrb[10].mxu1 }
 0x37e   : > { %v2220_v2 = vpop.f32.mrb[11].mxu1  ;;  %v1033_v3 = vsel %vm873_vm4, %v1032_v62, -inf }
 0x37f   : > { %1034 = vmax.xlane.f32.xlu0 %v1033_v3 }
 0x383   : > { %v1138_v4 = vpop.f32.mrb[12].mxu1 }
 0x384   : > { %v1144_v5 = vmul.f32 0.35355338, %v1138_v4  ;;  %v2231_v6 = vpop.f32.mrb[13].mxu1 }
 0x385   : > { %v1141_v7 = vpop.f32.mrb[14].mxu1 }
 0x386   : > { %v2232_v9 = vpop.f32.mrb[15].mxu1  ;;  %v1145_v10 = vsel %vm873_vm4, %v1144_v5, -inf }
 0x387   : > { %1146 = vmax.xlane.f32.xlu1 %v1145_v10  ;;  %v2282_v9 = vld [vmem:[%s2781_s10] sm:$0xff]   ;;  %v2283_v10 = vld [vmem:[%s2781_s10 + $0x8] sm:$0xff]  }
 0x388   : > { %2252 = vmatpush3.bf16.msra.mxu1 %v2282_v9  ;;  %v2302_v9 = vld [vmem:[%s2787_s16 + $0x8] sm:$0xff]  }
 0x389   : > { %2253 = vmatprep.subr.bf16.mxu1 %v2360_v8 }
 0x38b   : > { %v1249_v11 = vpop.f32.mrb[16].mxu1 }
 0x38c   : > { %v1255_v12 = vmul.f32 0.35355338, %v1249_v11  ;;  %v2243_v13 = vpop.f32.mrb[17].mxu1  ;;  %2254 = vmatpush3.bf16.msra.mxu1 %v2283_v10  ;;  %v2303_v10 = vld [vmem:[%s2787_s16 + $0x88] sm:$0xff]  }
 0x38d   : > { %v1252_v14 = vpop.f32.mrb[18].mxu1 }
 0x38e   : > { %v2244_v15 = vpop.f32.mrb[19].mxu1  ;;  %v1256_v16 = vsel %vm873_vm4, %v1255_v12, -inf }
 0x38f   : > { %1257 = vmax.xlane.f32.xlu1 %v1256_v16 }
 0x399   : > { %v923_v17 = vpop.xlane.xlu1 %922 }
 0x39a   : > { %v924_v18 = vsub.f32 %v920_v56, %v923_v17 }
 0x39c   : > { %v925_v19 = vmul.f32 1.442695, %v924_v18 }
 0x39e   : > { %2332 = vpow2.f32 %v925_v19 }
 0x3a8   : > { %v2333_v25 = vpop.eup %2332 }
 0x3a9   : > { %v927_v27 = vsel %vm873_vm4, %v2333_v25, 0.0 }
 0x3aa   : > { %928 = vadd.xlane.f32.xlu0 %v927_v27 }
 0x40c   : > { %v1035_v30 = vpop.xlane.xlu0 %1034 }
 0x40d   : > { %v1036_v31 = vsub.f32 %v1032_v62, %v1035_v30 }
 0x40f   : > { %v1037_v32 = vmul.f32 1.442695, %v1036_v31 }
 0x411   : > { %2334 = vpow2.f32 %v1037_v32 }
 0x414   : > { %v1147_v33 = vpop.xlane.xlu1 %1146 }
 0x415   : > { %v1148_v34 = vsub.f32 %v1144_v5, %v1147_v33 }
 0x417   : > { %v1149_v35 = vmul.f32 1.442695, %v1148_v34 }
 0x419   : > { %2336 = vpow2.f32 %v1149_v35 }
 0x41b   : > { %v2335_v36 = vpop.eup %2334 }
 0x41c   : > { %v1039_v37 = vsel %vm873_vm4, %v2335_v36, 0.0  ;;  %v1258_v41 = vpop.xlane.xlu1 %1257 }
 0x41d   : > { %1040 = vadd.xlane.f32.xlu1 %v1039_v37  ;;  %v1259_v42 = vsub.f32 %v1255_v12, %v1258_v41 }
 0x41f   : > { %v1260_v43 = vmul.f32 1.442695, %v1259_v42  ;;  %v2284_v42 = vld [vmem:[%s2785_s14] ss:$16 sps:$4 sm:$0xff]  }
 0x423   : > { %v2337_v38 = vpop.eup %2336 }
 0x424   : > { %v1151_v39 = vsel %vm873_vm4, %v2337_v38, 0.0 }
 0x425   : > { %1152 = vadd.xlane.f32.xlu0 %v1151_v39 }
 0x42e   : > { %1157 = vrot.lane.b32.xlu1 %v872_v28, %s2363_s30 }
 0x437   : > { %v929_v40 = vpop.xlane.xlu0 %928 }
 0x438   : > { %2338 = vrcp.f32 %v929_v40 }
 0x439   : > { %2340 = vpow2.f32 %v1260_v43  ;;  %v2287_v43 = vld [vmem:[%s2785_s14 + $0x8] ss:$16 sps:$4 sm:$0xff]  }
 0x43b   : > { %1046 = vrot.lane.b32.xlu0 %v872_v28, %s2362_s29 }
 0x442   : > { %v2339_v44 = vpop.eup %2338 }
 0x443   : > { %v931_v45 = vmul.f32 %v2339_v44, %v2333_v25  ;;  %v2341_v47 = vpop.eup %2340  ;;  %v2289_v44 = vld [vmem:[%s2785_s14 + $0xc] ss:$16 sps:$4 sm:$0xff]  }
 0x444   : > { %v1262_v48 = vsel %vm873_vm4, %v2341_v47, 0.0  ;;  %1552 = vmatprep.subr.bf16.mxu1 %v2289_v44 }
 0x445   : > { %v932_v46 = vpack.c.bf16 %v931_v45, %v931_v45  ;;  %v2292_v45 = vld [vmem:[%s2785_s14 + $0x24] ss:$16 sps:$4 sm:$0xff]  }
 0x447   : > { %2212 = vmatmul.mubr.msk.bf16.vlgmr.msra.gmra.mrb[8].mxu0 %vm873_vm4, %v932_v46  ;;  %v2295_v46 = vld [vmem:[%s2785_s14 + $0x2c] ss:$16 sps:$4 sm:$0xff]  }
 0x448   : > { %2223 = vmatprep.mubr.msk.bf16.mxu0 %vm2361_vm1, %v2360_v8 }
 0x452   : > { %1263 = vadd.xlane.f32.xlu1 %v1262_v48  ;;  %v2293_v48 = vld [vmem:[%s2785_s14 + $0x28] ss:$16 sps:$4 sm:$0xff]  }
 0x463   : > { %1268 = vrot.lane.b32.xlu1 %v872_v28, %s2364_s22  ;;  %s2367_s22 = smov 24  }
 0x4aa   : > { %v1041_v49 = vpop.xlane.xlu1 %1040 }
 0x4ab   : > { %2342 = vrcp.f32 %v1041_v49  ;;  %v2368_v49 = vmov 0  }
 0x4ae   : > { %v1158_v55 = vpop.permute.xlu1 %1157 }
 0x4af   : > { %v1163_v57 = vsel %vm936_vm5, %v1158_v55, 0 }
 0x4b2   : > { %v1153_v50 = vpop.xlane.xlu0 %1152 }
 0x4b3   : > { %2344 = vrcp.f32 %v1153_v50  ;;  %v2296_v50 = vld [vmem:[%s2787_s16 + $0x40] sm:$0xff]  }
 0x4b5   : > { %v2343_v51 = vpop.eup %2342 }
 0x4b6   : > { %v1043_v52 = vmul.f32 %v2343_v51, %v2335_v36  ;;  %v1047_v53 = vpop.permute.xlu0 %1046  ;;  %v2297_v51 = vld [vmem:[%s2787_s16 + $0xc0] sm:$0xff]  }
 0x4b7   : > { %v1052_v54 = vsel %vm936_vm5, %v1047_v53, 0 }
 0x4b8   : > { %2222 = vmatpush3.bf16.msra.mxu0 %v1052_v54  ;;  %v1044_v56 = vpack.c.bf16 %v1043_v52, %v1043_v52 }
 0x4b9   : > { %2233 = vmatprep.subr.bf16.mxu0 %v2360_v8 }
 0x4bb   : > { %2224 = vmatmul.mubr.msk.bf16.vlgmr.msra.gmra.mrb[12].mxu0 %vm873_vm4, %v1044_v56 }
 0x4bc   : > { %2234 = vmatpush3.bf16.msra.mxu0 %v1163_v57  ;;  %2235 = vmatprep.mubr.msk.bf16.mxu0 %vm2361_vm1, %v2360_v8 }
 0x4bd   : > { %v2345_v58 = vpop.eup %2344  ;;  %2245 = vmatprep.subr.bf16.mxu0 %v2360_v8 }
 0x4be   : > { %v1155_v59 = vmul.f32 %v2345_v58, %v2337_v38 }
 0x4c0   : > { %v1156_v60 = vpack.c.bf16 %v1155_v59, %v1155_v59 }
 0x4c3   : > { %2236 = vmatmul.mubr.msk.bf16.vlgmr.msra.gmra.mrb[16].mxu0 %vm873_vm4, %v1156_v60  ;;  %v2060_v60 = vld [vmem:[%s2783_s12] ss:$0 sm:$0xff] }
 0x4c4   : > { %2247 = vmatprep.mubr.msk.bf16.mxu0 %vm2361_vm1, %v2360_v8 }
 0x4df   : > { %v1264_v61 = vpop.xlane.xlu1 %1263 }
 0x4e0   : > { %2346 = vrcp.f32 %v1264_v61 }
 0x4e3   : > { %v1269_v62 = vpop.permute.xlu1 %1268 }
 0x4e4   : > { %v1274_v63 = vsel %vm936_vm5, %v1269_v62, 0 }
 0x4e5   : > { %2246 = vmatpush3.bf16.msra.mxu0 %v1274_v63  ;;  %v2061_v63 = vld [vmem:[%s2784_s13] ss:$0 sm:$0xff] }
 0x4ea   : > { %v2347_v1 = vpop.eup %2346 }
 0x4eb   : > { %v1266_v2 = vmul.f32 %v2347_v1, %v2341_v47  ;;  %v2290_v47 = vld [vmem:[%s2785_s14 + $0x20] ss:$16 sps:$4 sm:$0xff]  }
 0x4ed   : > { %v1267_v3 = vpack.c.bf16 %v1266_v2, %v1266_v2 }
 0x4ef   : > { %2248 = vmatmul.mubr.msk.bf16.vlgmr.msra.gmra.mrb[20].mxu0 %vm873_vm4, %v1267_v3  ;;  %v2298_v3 = vld [vmem:[%s2787_s16] sm:$0xff]  }
 0x4f0   : > { %1543 = vmatprep.mubr.bf16.mxu0 %v2368_v49 }
 0x51a   : > { %v974_v4 = vpop.f32.mrb[8].mxu0 }
 0x51b   : > { %v2213_v5 = vpop.f32.mrb[9].mxu0 }
 0x51c   : > { %v977_v6 = vpop.f32.mrb[10].mxu0 }
 0x51d   : > { %v2214_v7 = vpop.f32.mrb[11].mxu0  ;;  %v2300_v6 = vld [vmem:[%s2787_s16 + $0x48] sm:$0xff]  }
 0x51e   : > { %v2301_v7 = vld [vmem:[%s2787_s16 + $0xc8] sm:$0xff]  }
 0x58e   : > { %v1088_v11 = vpop.f32.mrb[12].mxu0 }
 0x58f   : > { %1317 = vrot.lane.b32.xlu0 %v1088_v11, %s2365_s21  ;;  %v2225_v12 = vpop.f32.mrb[13].mxu0  ;;  %v2304_v11 = vld [vmem:[%s2787_s16 + $0x50] sm:$0xff]  }
 0x590   : > { %v1091_v13 = vpop.f32.mrb[14].mxu0  ;;  %v2305_v12 = vld [vmem:[%s2787_s16 + $0xd0] sm:$0xff]  }
 0x591   : > { %v2226_v14 = vpop.f32.mrb[15].mxu0  ;;  %v2306_v13 = vld [vmem:[%s2787_s16 + $0x10] sm:$0xff]  }
 0x592   : > { %v2307_v14 = vld [vmem:[%s2787_s16 + $0x90] sm:$0xff]  }
 0x596   : > { %v1199_v15 = vpop.f32.mrb[16].mxu0 }
 0x597   : > { %1321 = vrot.lane.b32.xlu1 %v1199_v15, %s2366_s1  ;;  %v2237_v16 = vpop.f32.mrb[17].mxu0  ;;  %v2308_v15 = vld [vmem:[%s2787_s16 + $0x58] sm:$0xff]  }
 0x598   : > { %v1202_v17 = vpop.f32.mrb[18].mxu0  ;;  %v2309_v16 = vld [vmem:[%s2787_s16 + $0xd8] sm:$0xff]  }
 0x599   : > { %v2238_v18 = vpop.f32.mrb[19].mxu0  ;;  %v2310_v17 = vld [vmem:[%s2787_s16 + $0x18] sm:$0xff]  }
 0x59a   : > { %v2311_v18 = vld [vmem:[%s2787_s16 + $0x98] sm:$0xff]  }
 0x5c2   : > { %v1310_v19 = vpop.f32.mrb[20].mxu0 }
 0x5c3   : > { %1325 = vrot.lane.b32.xlu0 %v1310_v19, %s2367_s22  ;;  %v2249_v20 = vpop.f32.mrb[21].mxu0  ;;  %v2312_v19 = vld [vmem:[%s2787_s16 + $0x60] sm:$0xff]  }
 0x5c4   : > { %v1313_v21 = vpop.f32.mrb[22].mxu0  ;;  %v2313_v20 = vld [vmem:[%s2787_s16 + $0xe0] sm:$0xff]  }
 0x5c5   : > { %v2250_v22 = vpop.f32.mrb[23].mxu0  ;;  %v2314_v21 = vld [vmem:[%s2787_s16 + $0x20] sm:$0xff]  }
 0x5c6   : > { %v2315_v22 = vld [vmem:[%s2787_s16 + $0xa0] sm:$0xff]  }
 0x601   : > { %v1318_v8 = vpop.permute.xlu0 %1317 }
 0x602   : > { %v1328_v24 = vsel %vm873_vm4, %v974_v4, %v1318_v8  ;;  %v2299_v4 = vld [vmem:[%s2787_s16 + $0x80] sm:$0xff]   ;;  %v2316_v8 = vld [vmem:[%s2787_s16 + $0x68] sm:$0xff]  }
 0x609   : > { %v1322_v23 = vpop.permute.xlu1 %1321 }
 0x60a   : > { %v1330_v25 = vsel %vm1329_vm6, %v1328_v24, %v1322_v23  ;;  %v2317_v23 = vld [vmem:[%s2787_s16 + $0xe8] sm:$0xff]  }
 0x60b   : > { %v2318_v24 = vld [vmem:[%s2787_s16 + $0x28] sm:$0xff]  }
 0x635   : > { %v1326_v26 = vpop.permute.xlu0 %1325 }
 0x636   : > { %v1332_v27 = vsel %vm1331_vm7, %v1330_v25, %v1326_v26  ;;  %v2319_v25 = vld [vmem:[%s2787_s16 + $0xa8] sm:$0xff]   ;;  %v2320_v26 = vld [vmem:[%s2787_s16 + $0x70] sm:$0xff]  }
 0x637   : > { %v1333_v28 = vpack.c.bf16 %v1332_v27, %v1332_v27  ;;  %v2321_v27 = vld [vmem:[%s2787_s16 + $0xf0] sm:$0xff]  }
 0x639   : > { %2256 = vmatmul.mubr.msk.bf16.vlgmr.msra.gmra.mrb[20].mxu1 %vm634_vm0, %v1333_v28  ;;  %v2322_v28 = vld [vmem:[%s2787_s16 + $0x30] sm:$0xff]  }
 0x63a   : > { %1553 = vmatpush1.bf16.msra.mxu1 %v2287_v43  ;;  %1584 = vmatprep.mubr.bf16.mxu1 %v2368_v49 }
 0x63b   : > { %1554 = vmatprep.subr.bf16.mxu1 %v2295_v46 }
 0x63e   : > { %1555 = vmatpush1.bf16.msra.mxu1 %v2293_v48 }
 0x63f   : > { %2157 = vmatprep.subr.bf16.mxu1 %v2297_v51 }
 0x70c   : > { %v1394_v30 = vpop.f32.mrb[20].mxu1 }
 0x70d   : > { %v1395_v31 = vadd.f32 %v2056_v29, %v1394_v30  ;;  %v2257_v32 = vpop.f32.mrb[21].mxu1  ;;  %v2323_v29 = vld [vmem:[%s2787_s16 + $0xb0] sm:$0xff]   ;;  %v2324_v30 = vld [vmem:[%s2787_s16 + $0x78] sm:$0xff]  }
 0x70e   : > { %v1397_v33 = vpop.f32.mrb[22].mxu1  ;;  %v2326_v32 = vld [vmem:[%s2787_s16 + $0x38] sm:$0xff]  }
 0x70f   : > { %v2618_v34 = vadd.f32 %v1395_v31, %v2483_v0  ;;  %v2258_v35 = vpop.f32.mrb[23].mxu1  ;;  %v2286_v0 = vld [vmem:[%s2785_s14 + $0x4] ss:$16 sps:$4 sm:$0xff]   ;;  %v2325_v31 = vld [vmem:[%s2787_s16 + $0xf8] sm:$0xff]  }
 0x710   : > { %1511 = vmatprep.subr.bf16.mxu0 %v2286_v0  ;;  %v2327_v33 = vld [vmem:[%s2787_s16 + $0xb8] sm:$0xff]   ;;  %v1448_v35 = vlaneseq }
 0x711   : > { %v1401_v36 = vsel %vm634_vm0, %v2618_v34, 0.0  ;;  %1512 = vmatpush1.bf16.msra.mxu0 %v2284_v42 }
 0x712   : > { %1402 = vadd.xlane.f32.xlu1 %v1401_v36  ;;  %1513 = vmatprep.subr.bf16.mxu0 %v2292_v45  ;;  %v1449_v36 = vshrl.u32 %v1448_v35, 7 }
 0x715   : > { %1514 = vmatpush1.bf16.msra.mxu0 %v2290_v47 }
 0x716   : > { %2135 = vmatprep.subr.bf16.mxu0 %v2296_v50 }
 0x79f   : > { %v1403_v37 = vpop.xlane.xlu1 %1402 }
 0x7a0   : > { %v1404_v38 = vmul.f32 0.03125, %v1403_v37  ;;  %v1450_v37 = vsub.s32 0, %v1449_v36 }
 0x7a2   : > { %v1405_v39 = vsub.f32 %v2618_v34, %v1404_v38  ;;  %v1458_v38 = vsub.s32 2, %v1449_v36 }
 0x7a4   : > { %v1406_v40 = vmul.f32 %v1405_v39, %v1405_v39  ;;  %v1418_v61 = vmul.f32 %v2060_v60, %v1405_v39  ;;  %v1446_v39 = vld [vmem:[%s2786_s15] sm:$0xf] }
 0x7a5   : > { %v1451_v42 = vrot.slane %v1446_v39, %v1450_v37  ;;  %v1459_v0 = vrot.slane %v1446_v39, %v1458_v38 }
 0x7a6   : > { %v1407_v41 = vsel %vm634_vm0, %v1406_v40, 0.0  ;;  %v1454_v40 = vsub.s32 1, %v1449_v36 }
 0x7a7   : > { %1408 = vadd.xlane.f32.xlu0 %v1407_v41  ;;  %v1462_v41 = vsub.s32 3, %v1449_v36 }
 0x7a8   : > { %v1455_v43 = vrot.slane %v1446_v39, %v1454_v40 }
 0x7a9   : > { %v1463_v44 = vrot.slane %v1446_v39, %v1462_v41 }
 0x834   : > { %v1409_v52 = vpop.xlane.xlu0 %1408 }
 0x835   : > { %v1410_v53 = vmul.f32 0.032258064, %v1409_v52 }
 0x837   : > { %2348 = vrsqrt.f32 %v1410_v53  ;;  %vm1421_vm8 = vcmp.eq.f32.partialorder %v1410_v53, inf  ;;  %v1424_v56 = vand.u32 2147483648, %v1410_v53  ;;  %vm1423_vm9 = vcmp.eq.f32.partialorder %v1410_v53, 0.0 }
 0x841   : > { %v2349_v54 = vpop.eup %2348 }
 0x842   : > { %v1420_v55 = vmul.f32 %v2349_v54, %v1410_v53 }
 0x844   : > { %v1422_v57 = vsel %vm1421_vm8, %v1410_v53, %v1420_v55 }
 0x845   : > { %v1425_v58 = vsel %vm1423_vm9, %v1424_v56, %v1422_v57 }
 0x846   : > { %v1426_v59 = vadd.f32 1e-06, %v1425_v58 }
 0x848   : > { %2350 = vrcp.f32 %v1426_v59 }
 0x852   : > { %v2351_v62 = vpop.eup %2350 }
 0x853   : > { %v1428_v1 = vmul.f32 %v2351_v62, %v1418_v61 }
 0x855   : > { %v1436_v2 = vadd.f32 %v2061_v63, %v1428_v1 }
 0x857   : > { %v1437_v5 = vpack.c.bf16 %v1436_v2, %v1436_v2 }
 0x859   : > { %2070 = vmatmul.mubr.msk.bf16.vlgmr.msra.gmra.mrb[24].mxu0 %vm634_vm0, %v1437_v5  ;;  %2071 = vmatmul.mubr.msk.bf16.vlgmr.msra.gmra.mrb[24].mxu1 %vm634_vm0, %v1437_v5 }
 0x85a   : > { %2136 = vmatpush3.bf16.msra.mxu0 %v2298_v3  ;;  %2158 = vmatpush3.bf16.msra.mxu1 %v2299_v4  ;;  %v2072_v4 = vld [vmem:[%s2788_s17] ss:$0 sm:$0xff] }
 0x85b   : > { %2137 = vmatprep.subr.bf16.mxu0 %v2300_v6  ;;  %2159 = vmatprep.subr.bf16.mxu1 %v2301_v7 }
 0x85e   : > { %2138 = vmatpush3.bf16.msra.mxu0 %v2302_v9  ;;  %2160 = vmatpush3.bf16.msra.mxu1 %v2303_v10 }
 0x85f   : > { %2139 = vmatprep.subr.bf16.mxu0 %v2304_v11  ;;  %2161 = vmatprep.subr.bf16.mxu1 %v2305_v12 }
 0x862   : > { %2140 = vmatpush3.bf16.msra.mxu0 %v2306_v13  ;;  %2162 = vmatpush3.bf16.msra.mxu1 %v2307_v14 }
 0x863   : > { %2141 = vmatprep.subr.bf16.mxu0 %v2308_v15  ;;  %2163 = vmatprep.subr.bf16.mxu1 %v2309_v16  ;;  %v1945_v16 = vld [vmem:[%s627_s23] sm:$0xff] }
 0x866   : > { %2142 = vmatpush3.bf16.msra.mxu0 %v2310_v17  ;;  %2164 = vmatpush3.bf16.msra.mxu1 %v2311_v18 }
 0x867   : > { %2143 = vmatprep.subr.bf16.mxu0 %v2312_v19  ;;  %2165 = vmatprep.subr.bf16.mxu1 %v2313_v20 }
 0x86a   : > { %2144 = vmatpush3.bf16.msra.mxu0 %v2314_v21  ;;  %2166 = vmatpush3.bf16.msra.mxu1 %v2315_v22 }
 0x86b   : > { %2145 = vmatprep.subr.bf16.mxu0 %v2316_v8  ;;  %2167 = vmatprep.subr.bf16.mxu1 %v2317_v23 }
 0x86e   : > { %2146 = vmatpush3.bf16.msra.mxu0 %v2318_v24  ;;  %2168 = vmatpush3.bf16.msra.mxu1 %v2319_v25 }
 0x86f   : > { %2147 = vmatprep.subr.bf16.mxu0 %v2320_v26  ;;  %2169 = vmatprep.subr.bf16.mxu1 %v2321_v27 }
 0x872   : > { %2148 = vmatpush3.bf16.msra.mxu0 %v2322_v28  ;;  %2170 = vmatpush3.bf16.msra.mxu1 %v2323_v29 }
 0x873   : > { %2149 = vmatprep.subr.bf16.mxu0 %v2324_v30  ;;  %2171 = vmatprep.subr.bf16.mxu1 %v2325_v31 }
 0x876   : > { %2150 = vmatpush3.bf16.msra.mxu0 %v2326_v32  ;;  %2172 = vmatpush3.bf16.msra.mxu1 %v2327_v33 }
 0x92c   : > { %v1545_v45 = vpop.f32.mrb[24].mxu0  ;;  %v1586_v46 = vpop.f32.mrb[24].mxu1 }
 0x92d   : > { %v1546_v47 = vadd.f32 %v1545_v45, %v1451_v42  ;;  %v1587_v48 = vadd.f32 %v1586_v46, %v1459_v0  ;;  %v1547_v49 = vpop.f32.mrb[25].mxu0  ;;  %v1588_v50 = vpop.f32.mrb[25].mxu1 }
 0x92e   : > { %v1548_v51 = vadd.f32 %v1547_v49, %v1455_v43  ;;  %v1589_v52 = vadd.f32 %v1588_v50, %v1463_v44  ;;  %v1549_v53 = vpop.f32.mrb[26].mxu0  ;;  %v1590_v54 = vpop.f32.mrb[26].mxu1 }
 0x92f   : > { %v1593_v55 = vmax.f32 %v1546_v47, 0.0  ;;  %v1595_v56 = vmax.f32 %v1587_v48, 0.0  ;;  %v1550_v57 = vpop.f32.mrb[27].mxu0  ;;  %v1591_v58 = vpop.f32.mrb[27].mxu1 }
 0x930   : > { %v1594_v59 = vmax.f32 %v1548_v51, 0.0  ;;  %v1596_v60 = vmax.f32 %v1589_v52, 0.0 }
 0x931   : > { %v1597_v63 = vpack.c.bf16 %v1593_v55, %v1593_v55  ;;  %v1599_v1 = vpack.c.bf16 %v1595_v56, %v1595_v56 }
 0x932   : > { %v1598_v61 = vpack.c.bf16 %v1594_v59, %v1594_v59  ;;  %v1600_v62 = vpack.c.bf16 %v1596_v60, %v1596_v60 }
 0x934   : > { %1896 = vmatprep.mubr.bf16.mxu0 %v1598_v61  ;;  %1936 = vmatprep.mubr.bf16.mxu1 %v1600_v62 }
 0x935   : > { %1897 = vmatmul.mubr.bf16.vlgmr.msra.gmra.mrb[28].mxu0 %v1597_v63  ;;  %1937 = vmatmul.mubr.bf16.vlgmr.msra.gmra.mrb[28].mxu1 %v1599_v1 }
 0xa08   : > { %v2151_v2 = vpop.f32.mrb[28].mxu0  ;;  %v2173_v3 = vpop.f32.mrb[28].mxu1 }
 0xa09   : > { %v2152_v5 = vpop.f32.mrb[29].mxu0  ;;  %v2174_v6 = vpop.f32.mrb[29].mxu1 }
 0xa0a   : > { %v2153_v7 = vadd.f32 %v2152_v5, %v2151_v2  ;;  %v2175_v9 = vadd.f32 %v2174_v6, %v2173_v3  ;;  %v2154_v10 = vpop.f32.mrb[30].mxu0  ;;  %v2176_v11 = vpop.f32.mrb[30].mxu1 }
 0xa0b   : > { %v2155_v12 = vpop.f32.mrb[31].mxu0  ;;  %v2177_v13 = vpop.f32.mrb[31].mxu1 }
 0xa0c   : > { %v1899_v14 = vadd.f32 %v2153_v7, %v2072_v4 }
 0xa0e   : > { %v1939_v15 = vadd.f32 %v2175_v9, %v1899_v14 }
 0xa10   : > { %v1944_v17 = vadd.f32 %v1939_v15, %v2618_v34 }
 0xa12   : > { %v1946_v18 = vadd.f32 %v1945_v16, %v1944_v17 }
 0xa14   : > { %1947 = vst.msk [vmem:[%s631_s3] sm:$0xff] %vm634_vm0, %v1946_v18 }
 0xa15 PF: > { %s29_s0 = sadd.s32 1, %s2358_s0  }
 0xa16   : > { %p26_p4 = scmp.ge.s32.totalorder %s29_s0, 4  }
 0xa18   :  { %28 = sbr.rel (!%p26_p4) target bundleno = 5 (0x5), region = 132 }

</bundles_post_ra>
